<compile_context>
chip_gen: v7x
topology: tpu7x:2x2x1
jax: 0.10.0
libtpu: 0.0.40
codegen_flags: <defaults>
</compile_context>

<pallas_src>
import functools

import jax
import jax.numpy as jnp
from jax.experimental import pallas as pl
from jax.experimental.pallas import tpu as pltpu

# ----------------------------- model config ---------------------------------
POINTS_PER_UNIT = 16
NUM_HALVING_LAYERS = 0          # rho is a SimpleConv-style CNN (no down/upsampling)
RHO_IN = 8                      # rho.in_channels  (== encoder out_channels)
RHO_HIDDEN = 16
RHO_OUT = 8                     # rho.out_channels (== FinalLayer in_channels)
KSIZE = 5                       # Conv1d kernel size, padding = 2 ("same")
LANES = 128


def to_multiple(x, multiple):
    if x % multiple == 0:
        return x
    return x + multiple - x % multiple


# --------------------------- fused forward kernel ----------------------------
def _fused_kernel(enc_inv_ref, enc_w_ref, enc_b_ref,
                  cw1_ref, cb1_ref, cw2_ref, cb2_ref, cw3_ref, cb3_ref,
                  hinv_ref, hw_ref, hb_ref,
                  grid_ref, x_ref, y_ref, t_ref, o_ref, *, m, ksize):
    pad = (ksize - 1) // 2
    g2 = grid_ref[0]                                       # (1, MP)
    mp = g2.shape[1]
    # static mask for the lane-padded grid columns (m is a trace-time int)
    valid = jax.lax.broadcasted_iota(jnp.int32, (1, mp), 1) < m

    # ---- ConvDeepSet encoder: RBF set-conv + density norm + Linear(2->C) + sigmoid
    xr = x_ref[0]                                          # (n, 1) ctx locations
    yr = y_ref[0]                                          # (n, 1) ctx values
    d_enc = -0.5 * (xr - g2) ** 2                          # (n, MP) lane-dense
    rbf_den = jnp.exp(d_enc * enc_inv_ref[0])              # density-channel RBF
    rbf_val = jnp.exp(d_enc * enc_inv_ref[1])              # value-channel RBF
    density = jnp.sum(rbf_den, axis=0, keepdims=True)      # (1, MP)
    conv = jnp.sum(yr * rbf_val, axis=0, keepdims=True)    # (1, MP)
    norm = conv / (density + 1e-8)
    ew = enc_w_ref[...]                                    # (C, 2)
    h = jax.nn.sigmoid(ew[:, 0:1] * density + ew[:, 1:2] * norm + enc_b_ref[...])
    h = jnp.where(valid, h, 0.0)                           # (C, MP), zero beyond m

    # ---- rho CNN: each Conv1d(SAME) is ONE im2col matmul on the MXU
    def conv_same(a, w2, bcol, relu):
        cin = a.shape[0]
        zp = jnp.zeros((cin, pad), jnp.float32)
        a_pad = jnp.concatenate([zp, a, zp], axis=1)       # (cin, MP + 2*pad)
        xcol = jnp.concatenate(
            [jax.lax.slice_in_dim(a_pad, k, k + mp, axis=1) for k in range(ksize)],
            axis=0)                                        # (K*cin, MP)
        out = jnp.dot(w2, xcol, preferred_element_type=jnp.float32) + bcol
        if relu:
            out = jnp.maximum(out, 0.0)
        return jnp.where(valid, out, 0.0)                  # keep halo exactly zero

    h = conv_same(h, cw1_ref[...], cb1_ref[...], True)
    h = conv_same(h, cw2_ref[...], cb2_ref[...], True)
    h = conv_same(h, cw3_ref[...], cb3_ref[...], False)    # (Co, MP)
    co = h.shape[0]

    # ---- mean & sigma FinalLayers, fused: shared distances / shared h,
    #      2*Co per-channel RBFs in one batched exp.
    t3 = t_ref[0]                                          # (nt, 1, 1)
    g3 = grid_ref[...]                                     # (1, 1, MP)
    dh = -0.5 * (t3 - g3) ** 2                             # (nt, 1, MP)
    wexp = jnp.exp(dh * hinv_ref[...])                     # (nt, 2*Co, MP)
    hw = hw_ref[...] * jnp.concatenate([h, h], axis=0)     # (2*Co, MP)  w_c * h_c
    per = jnp.sum(wexp * hw, axis=2, keepdims=True)        # (nt, 2*Co, 1)
    mean3 = jnp.sum(per[:, :co, :], axis=1, keepdims=True) + hb_ref[0]      # (nt,1,1)
    sig3 = jax.nn.softplus(
        jnp.sum(per[:, co:, :], axis=1, keepdims=True) + hb_ref[1])         # (nt,1,1)
    o_ref[0] = jnp.concatenate([mean3, sig3], axis=1)      # (nt, 2, 1)


def _forward_impl(params, x, y, x_out, x_grid):
    B, n, _ = x.shape
    nt = x_out.shape[1]
    m = x_grid.shape[0]
    mp = int(to_multiple(m, LANES))                        # lane-dense grid length
    C = RHO_IN
    Co = RHO_OUT
    f32 = jnp.float32

    grid_pad = jnp.zeros((1, 1, mp), f32).at[0, 0, :m].set(x_grid.astype(f32))

    # precompute 1/sigma^2 (= exp(-2*log_sigma)) so the kernel does no divides
    enc_inv = jnp.exp(-2.0 * params["enc_sigma"])                        # (2,)
    enc_w_k = jnp.transpose(params["enc_w"], (1, 0))                     # (C, 2)
    enc_b_k = params["enc_b"].reshape(C, 1)

    def conv_w2(w):                                        # (K, Cin, Cout) -> (Cout, K*Cin)
        K, Cin, Cout = w.shape
        return jnp.transpose(w, (2, 0, 1)).reshape(Cout, K * Cin)

    cw1 = conv_w2(params["conv1_w"]); cb1 = params["conv1_b"].reshape(RHO_HIDDEN, 1)
    cw2 = conv_w2(params["conv2_w"]); cb2 = params["conv2_b"].reshape(RHO_HIDDEN, 1)
    cw3 = conv_w2(params["conv3_w"]); cb3 = params["conv3_b"].reshape(RHO_OUT, 1)

    head_inv = jnp.concatenate(
        [jnp.exp(-2.0 * params["mean_sigma"]),
         jnp.exp(-2.0 * params["sigma_sigma"])]).reshape(1, 2 * Co, 1)
    head_w = jnp.concatenate([params["mean_w"], params["sigma_w"]]).reshape(2 * Co, 1)
    head_b = jnp.concatenate([params["mean_b"], params["sigma_b"]])      # (2,)

    x_out4 = x_out[..., None]                                            # (B, nt, 1, 1)

    out = pl.pallas_call(
        functools.partial(_fused_kernel, m=m, ksize=KSIZE),
        out_shape=jax.ShapeDtypeStruct((B, nt, 2, 1), f32),
        grid=(B,),
        in_specs=[
            pl.BlockSpec(memory_space=pltpu.MemorySpace.SMEM),           # enc_inv (2,)
            pl.BlockSpec((C, 2), lambda i: (0, 0)),                      # enc_w_k
            pl.BlockSpec((C, 1), lambda i: (0, 0)),                      # enc_b_k
            pl.BlockSpec((RHO_HIDDEN, KSIZE * RHO_IN), lambda i: (0, 0)),     # cw1
            pl.BlockSpec((RHO_HIDDEN, 1), lambda i: (0, 0)),                  # cb1
            pl.BlockSpec((RHO_HIDDEN, KSIZE * RHO_HIDDEN), lambda i: (0, 0)), # cw2
            pl.BlockSpec((RHO_HIDDEN, 1), lambda i: (0, 0)),                  # cb2
            pl.BlockSpec((RHO_OUT, KSIZE * RHO_HIDDEN), lambda i: (0, 0)),    # cw3
            pl.BlockSpec((RHO_OUT, 1), lambda i: (0, 0)),                     # cb3
            pl.BlockSpec((1, 2 * Co, 1), lambda i: (0, 0, 0)),           # head 1/s^2
            pl.BlockSpec((2 * Co, 1), lambda i: (0, 0)),                 # head w
            pl.BlockSpec(memory_space=pltpu.MemorySpace.SMEM),           # head b (2,)
            pl.BlockSpec((1, 1, mp), lambda i: (0, 0, 0)),               # grid (padded)
            pl.BlockSpec((1, n, 1), lambda i: (i, 0, 0)),                # x
            pl.BlockSpec((1, n, 1), lambda i: (i, 0, 0)),                # y
            pl.BlockSpec((1, nt, 1, 1), lambda i: (i, 0, 0, 0)),         # x_out
        ],
        out_specs=pl.BlockSpec((1, nt, 2, 1), lambda i: (i, 0, 0, 0)),
        compiler_params=pltpu.CompilerParams(dimension_semantics=("parallel",)),
    )(enc_inv, enc_w_k, enc_b_k, cw1, cb1, cw2, cb2, cw3, cb3,
      head_inv, head_w, head_b, grid_pad, x, y, x_out4)

    mean = out[:, :, 0, :]                                 # (B, nt, 1)
    sigma = out[:, :, 1, :]                                # (B, nt, 1)
    return mean, sigma


_forward = jax.jit(_forward_impl)


# ------------------------------ parameters -----------------------------------
def init_params(key):
    init_ls = 2.0 / POINTS_PER_UNIT
    ks = jax.random.split(key, 9)

    def xavier(k, shape, fan_in, fan_out):
        std = (2.0 / (fan_in + fan_out)) ** 0.5
        return std * jax.random.normal(k, shape, jnp.float32)

    return {
        # ConvDeepSet encoder
        "enc_sigma": jnp.log(init_ls) * jnp.ones((2,), jnp.float32),
        "enc_w": xavier(ks[0], (2, RHO_IN), 2, RHO_IN),
        "enc_b": jnp.zeros((1, RHO_IN), jnp.float32),
        # rho CNN (weights stored as (K, Cin, Cout) == WIO)
        "conv1_w": 0.2 * jax.random.normal(ks[1], (KSIZE, RHO_IN, RHO_HIDDEN), jnp.float32),
        "conv1_b": 0.1 * jax.random.normal(ks[2], (1, RHO_HIDDEN), jnp.float32),
        "conv2_w": 0.2 * jax.random.normal(ks[3], (KSIZE, RHO_HIDDEN, RHO_HIDDEN), jnp.float32),
        "conv2_b": 0.1 * jax.random.normal(ks[4], (1, RHO_HIDDEN), jnp.float32),
        "conv3_w": 0.2 * jax.random.normal(ks[5], (KSIZE, RHO_HIDDEN, RHO_OUT), jnp.float32),
        "conv3_b": 0.1 * jax.random.normal(ks[6], (1, RHO_OUT), jnp.float32),
        # mean / sigma FinalLayers
        "mean_sigma": jnp.log(init_ls) * jnp.ones((RHO_OUT,), jnp.float32),
        "mean_w": xavier(ks[7], (RHO_OUT,), RHO_OUT, 1),
        "mean_b": jnp.zeros((1,), jnp.float32),
        "sigma_sigma": jnp.log(init_ls) * jnp.ones((RHO_OUT,), jnp.float32),
        "sigma_w": xavier(ks[8], (RHO_OUT,), RHO_OUT, 1),
        "sigma_b": jnp.zeros((1,), jnp.float32),
    }


# ------------------------------ forward pass ---------------------------------
def make_grid(x, x_out):
    # mirrors the host-side .cpu().numpy() grid sizing of the PyTorch model
    x_min = min(float(jnp.min(x)), float(jnp.min(x_out)), -2.0) - 0.1
    x_max = max(float(jnp.max(x)), float(jnp.max(x_out)), 2.0) + 0.1
    multiplier = 2 ** NUM_HALVING_LAYERS
    num_points = int(to_multiple(POINTS_PER_UNIT * (x_max - x_min), multiplier))
    return jnp.linspace(x_min, x_max, num_points).astype(jnp.float32)


def convcnp_forward(params, x, y, x_out):
    x_grid = make_grid(x, x_out)
    return _forward(params, x, y, x_out, x_grid)


# -------------------------- pure-JAX reference --------------------------------
def convcnp_reference(params, x, y, x_out, x_grid):
    B = x.shape[0]
    m = x_grid.shape[0]
    xg3 = jnp.broadcast_to(x_grid.reshape(1, m, 1), (B, m, 1))
    scales = jnp.exp(params["enc_sigma"])
    dists = (x - jnp.transpose(xg3, (0, 2, 1))) ** 2                 # (B, n, m)
    wt = jnp.exp(-0.5 * dists[..., None] / scales ** 2)              # (B, n, m, 2)
    y_cat = jnp.concatenate([jnp.ones_like(y), y], axis=2)           # (B, n, 2)
    y_sum = (y_cat[:, :, None, :] * wt).sum(1)                       # (B, m, 2)
    density, conv = y_sum[..., :1], y_sum[..., 1:]
    feat = jnp.concatenate([density, conv / (density + 1e-8)], axis=-1)
    h = jax.nn.sigmoid(feat @ params["enc_w"] + params["enc_b"])
    dn = ("NWC", "WIO", "NWC")
    h = jax.nn.relu(jax.lax.conv_general_dilated(
        h, params["conv1_w"], (1,), "SAME", dimension_numbers=dn) + params["conv1_b"])
    h = jax.nn.relu(jax.lax.conv_general_dilated(
        h, params["conv2_w"], (1,), "SAME", dimension_numbers=dn) + params["conv2_b"])
    h = jax.lax.conv_general_dilated(
        h, params["conv3_w"], (1,), "SAME", dimension_numbers=dn) + params["conv3_b"]

    def final(scl, w, b):
        d2 = (xg3 - jnp.transpose(x_out, (0, 2, 1))) ** 2            # (B, m, nt)
        wt2 = jnp.exp(-0.5 * d2[..., None] / scl ** 2)               # (B, m, nt, C)
        res = (h[:, :, None, :] * wt2).sum(1)                        # (B, nt, C)
        return res @ w[:, None] + b

    mean = final(jnp.exp(params["mean_sigma"]), params["mean_w"], params["mean_b"])
    sigma = jax.nn.softplus(
        final(jnp.exp(params["sigma_sigma"]), params["sigma_w"], params["sigma_b"]))
    return mean, sigma


# ----------------------------------- main -------------------------------------
if __name__ == "__main__":
    key = jax.random.PRNGKey(0)
    kx, ky, kt, kp = jax.random.split(key, 4)
    B, n_ctx, n_tgt = 2, 8, 8
    x = jax.random.uniform(kx, (B, n_ctx, 1), jnp.float32, -2.0, 2.0)
    y = jnp.sin(3.0 * x) + 0.1 * jax.random.normal(ky, (B, n_ctx, 1), jnp.float32)
    x_out = jax.random.uniform(kt, (B, n_tgt, 1), jnp.float32, -2.0, 2.0)
    params = init_params(kp)

    mean, sigma = convcnp_forward(params, x, y, x_out)
    mean = jax.block_until_ready(mean)
    sigma = jax.block_until_ready(sigma)

    # correctness check against plain-JAX reference
    x_grid = make_grid(x, x_out)
    mean_ref, sigma_ref = convcnp_reference(params, x, y, x_out, x_grid)
    assert mean.shape == (B, n_tgt, 1) and sigma.shape == (B, n_tgt, 1)
    assert jnp.allclose(mean, mean_ref, rtol=1e-3, atol=1e-4), "mean mismatch"
    assert jnp.allclose(sigma, sigma_ref, rtol=1e-3, atol=1e-4), "sigma mismatch"
    print("KERNEL_OK")
</pallas_src>

<mosaic_0001>
module attributes {stable_mosaic.version = 11 : i64} {
  func.func @_fused_kernel(%arg0: i32, %arg1: memref<2xf32, #tpu.memory_space<smem>>, %arg2: memref<8x2xf32, #tpu.memory_space<vmem>>, %arg3: memref<8x1xf32, #tpu.memory_space<vmem>>, %arg4: memref<16x40xf32, #tpu.memory_space<vmem>>, %arg5: memref<16x1xf32, #tpu.memory_space<vmem>>, %arg6: memref<16x80xf32, #tpu.memory_space<vmem>>, %arg7: memref<16x1xf32, #tpu.memory_space<vmem>>, %arg8: memref<8x80xf32, #tpu.memory_space<vmem>>, %arg9: memref<8x1xf32, #tpu.memory_space<vmem>>, %arg10: memref<1x16x1xf32, #tpu.memory_space<vmem>>, %arg11: memref<16x1xf32, #tpu.memory_space<vmem>>, %arg12: memref<2xf32, #tpu.memory_space<smem>>, %arg13: memref<1x1x128xf32, #tpu.memory_space<vmem>>, %arg14: memref<1x8x1xf32, #tpu.memory_space<vmem>>, %arg15: memref<1x8x1xf32, #tpu.memory_space<vmem>>, %arg16: memref<1x8x1x1xf32, #tpu.memory_space<vmem>>, %arg17: memref<1x8x2x1xf32, #tpu.memory_space<vmem>>) attributes {dimension_semantics = [#tpu.dimension_semantics<parallel>], iteration_bounds = array<i64: 2>, scalar_prefetch = 0 : i64, scratch_operands = 0 : i64, tpu.core_type = #tpu.core_type<tc>, window_params = [{transform_indices = @transform_0, window_bounds = array<i64: 2>}, {pipeline_mode = #tpu.pipeline_mode<synchronous>, transform_indices = @transform_1, window_bounds = array<i64: 8, 2>}, {pipeline_mode = #tpu.pipeline_mode<synchronous>, transform_indices = @transform_2, window_bounds = array<i64: 8, 1>}, {pipeline_mode = #tpu.pipeline_mode<synchronous>, transform_indices = @transform_3, window_bounds = array<i64: 16, 40>}, {pipeline_mode = #tpu.pipeline_mode<synchronous>, transform_indices = @transform_4, window_bounds = array<i64: 16, 1>}, {pipeline_mode = #tpu.pipeline_mode<synchronous>, transform_indices = @transform_5, window_bounds = array<i64: 16, 80>}, {pipeline_mode = #tpu.pipeline_mode<synchronous>, transform_indices = @transform_6, window_bounds = array<i64: 16, 1>}, {pipeline_mode = #tpu.pipeline_mode<synchronous>, transform_indices = @transform_7, window_bounds = array<i64: 8, 80>}, {pipeline_mode = #tpu.pipeline_mode<synchronous>, transform_indices = @transform_8, window_bounds = array<i64: 8, 1>}, {pipeline_mode = #tpu.pipeline_mode<synchronous>, transform_indices = @transform_9, window_bounds = array<i64: 1, 16, 1>}, {pipeline_mode = #tpu.pipeline_mode<synchronous>, transform_indices = @transform_10, window_bounds = array<i64: 16, 1>}, {transform_indices = @transform_11, window_bounds = array<i64: 2>}, {pipeline_mode = #tpu.pipeline_mode<synchronous>, transform_indices = @transform_12, window_bounds = array<i64: 1, 1, 128>}, {transform_indices = @transform_13, window_bounds = array<i64: 1, 8, 1>}, {transform_indices = @transform_14, window_bounds = array<i64: 1, 8, 1>}, {transform_indices = @transform_15, window_bounds = array<i64: 1, 8, 1, 1>}, {transform_indices = @transform_16, window_bounds = array<i64: 1, 8, 2, 1>}]} {
    %c0 = arith.constant 0 : index
    %c0_0 = arith.constant 0 : index
    %c0_1 = arith.constant 0 : index
    %0 = vector.load %arg13[%c0, %c0_0, %c0_1] : memref<1x1x128xf32, #tpu.memory_space<vmem>>, vector<1x1x128xf32>
    %1 = vector.shape_cast %0 : vector<1x1x128xf32> to vector<1x128xf32>
    %2 = tpu.iota {dimensions = array<i32: 1>} : vector<1x128xi32>
    %c68_i32 = arith.constant 68 : i32
    %3 = vector.broadcast %c68_i32 : i32 to vector<1x128xi32>
    %4 = arith.cmpi slt, %2, %3 : vector<1x128xi32>
    %c0_2 = arith.constant 0 : index
    %c0_3 = arith.constant 0 : index
    %c0_4 = arith.constant 0 : index
    %5 = vector.load %arg14[%c0_2, %c0_3, %c0_4] : memref<1x8x1xf32, #tpu.memory_space<vmem>>, vector<1x8x1xf32>
    %6 = vector.shape_cast %5 : vector<1x8x1xf32> to vector<8x1xf32>
    %c0_5 = arith.constant 0 : index
    %c0_6 = arith.constant 0 : index
    %c0_7 = arith.constant 0 : index
    %7 = vector.load %arg15[%c0_5, %c0_6, %c0_7] : memref<1x8x1xf32, #tpu.memory_space<vmem>>, vector<1x8x1xf32>
    %8 = vector.shape_cast %7 : vector<1x8x1xf32> to vector<8x1xf32>
    %9 = vector.broadcast %6 : vector<8x1xf32> to vector<8x128xf32>
    %10 = vector.broadcast %1 : vector<1x128xf32> to vector<8x128xf32>
    %11 = arith.subf %9, %10 : vector<8x128xf32>
    %12 = arith.mulf %11, %11 : vector<8x128xf32>
    %cst = arith.constant -5.000000e-01 : f32
    %13 = vector.broadcast %cst : f32 to vector<8x128xf32>
    %14 = arith.mulf %13, %12 : vector<8x128xf32>
    %c0_8 = arith.constant 0 : index
    %15 = memref.load %arg1[%c0_8] : memref<2xf32, #tpu.memory_space<smem>>
    %16 = vector.broadcast %15 : f32 to vector<8x128xf32>
    %17 = arith.mulf %14, %16 : vector<8x128xf32>
    %18 = math.exp %17 : vector<8x128xf32>
    %c1 = arith.constant 1 : index
    %19 = memref.load %arg1[%c1] : memref<2xf32, #tpu.memory_space<smem>>
    %20 = vector.broadcast %19 : f32 to vector<8x128xf32>
    %21 = arith.mulf %14, %20 : vector<8x128xf32>
    %22 = math.exp %21 : vector<8x128xf32>
    %cst_9 = arith.constant dense<0.000000e+00> : vector<128xf32>
    %23 = vector.multi_reduction <add>, %18, %cst_9 [0] : vector<8x128xf32> to vector<128xf32>
    %24 = vector.shape_cast %23 : vector<128xf32> to vector<1x128xf32>
    %25 = vector.broadcast %8 : vector<8x1xf32> to vector<8x128xf32>
    %26 = arith.mulf %25, %22 : vector<8x128xf32>
    %cst_10 = arith.constant dense<0.000000e+00> : vector<128xf32>
    %27 = vector.multi_reduction <add>, %26, %cst_10 [0] : vector<8x128xf32> to vector<128xf32>
    %28 = vector.shape_cast %27 : vector<128xf32> to vector<1x128xf32>
    %cst_11 = arith.constant 9.99999993E-9 : f32
    %29 = vector.broadcast %cst_11 : f32 to vector<1x128xf32>
    %30 = arith.addf %24, %29 : vector<1x128xf32>
    %31 = arith.divf %28, %30 : vector<1x128xf32>
    %c0_12 = arith.constant 0 : index
    %c0_13 = arith.constant 0 : index
    %32 = vector.load %arg2[%c0_12, %c0_13] : memref<8x2xf32, #tpu.memory_space<vmem>>, vector<8x2xf32>
    %33 = vector.extract_strided_slice %32 {offsets = [0, 0], sizes = [8, 1], strides = [1, 1]} : vector<8x2xf32> to vector<8x1xf32>
    %34 = vector.broadcast %33 : vector<8x1xf32> to vector<8x128xf32>
    %35 = vector.broadcast %24 : vector<1x128xf32> to vector<8x128xf32>
    %36 = arith.mulf %34, %35 : vector<8x128xf32>
    %37 = vector.extract_strided_slice %32 {offsets = [0, 1], sizes = [8, 1], strides = [1, 1]} : vector<8x2xf32> to vector<8x1xf32>
    %38 = vector.broadcast %37 : vector<8x1xf32> to vector<8x128xf32>
    %39 = vector.broadcast %31 : vector<1x128xf32> to vector<8x128xf32>
    %40 = arith.mulf %38, %39 : vector<8x128xf32>
    %41 = arith.addf %36, %40 : vector<8x128xf32>
    %c0_14 = arith.constant 0 : index
    %c0_15 = arith.constant 0 : index
    %42 = vector.load %arg3[%c0_14, %c0_15] : memref<8x1xf32, #tpu.memory_space<vmem>>, vector<8x1xf32>
    %43 = vector.broadcast %42 : vector<8x1xf32> to vector<8x128xf32>
    %44 = arith.addf %41, %43 : vector<8x128xf32>
    %45 = arith.negf %44 : vector<8x128xf32>
    %46 = math.exp %45 : vector<8x128xf32>
    %cst_16 = arith.constant 1.000000e+00 : f32
    %47 = vector.broadcast %cst_16 : f32 to vector<8x128xf32>
    %48 = arith.addf %47, %46 : vector<8x128xf32>
    %49 = arith.divf %47, %48 : vector<8x128xf32>
    %cst_17 = arith.constant 0.000000e+00 : f32
    %50 = vector.shape_cast %4 : vector<1x128xi1> to vector<1x128xi1>
    %51 = vector.broadcast %50 : vector<1x128xi1> to vector<8x128xi1>
    %52 = vector.broadcast %cst_17 : f32 to vector<8x128xf32>
    %53 = arith.select %51, %49, %52 : vector<8x128xi1>, vector<8x128xf32>
    %c0_18 = arith.constant 0 : index
    %c0_19 = arith.constant 0 : index
    %54 = vector.load %arg4[%c0_18, %c0_19] : memref<16x40xf32, #tpu.memory_space<vmem>>, vector<16x40xf32>
    %c0_20 = arith.constant 0 : index
    %c0_21 = arith.constant 0 : index
    %55 = vector.load %arg5[%c0_20, %c0_21] : memref<16x1xf32, #tpu.memory_space<vmem>>, vector<16x1xf32>
    %cst_22 = arith.constant 0.000000e+00 : f32
    %56 = vector.broadcast %cst_22 : f32 to vector<8x2xf32>
    %57 = tpu.concatenate %56, %53, %56 in 1 : vector<8x2xf32>, vector<8x128xf32>, vector<8x2xf32> -> vector<8x132xf32>
    %58 = vector.extract_strided_slice %57 {offsets = [0, 0], sizes = [8, 128], strides = [1, 1]} : vector<8x132xf32> to vector<8x128xf32>
    %59 = vector.extract_strided_slice %57 {offsets = [0, 1], sizes = [8, 128], strides = [1, 1]} : vector<8x132xf32> to vector<8x128xf32>
    %60 = vector.extract_strided_slice %57 {offsets = [0, 2], sizes = [8, 128], strides = [1, 1]} : vector<8x132xf32> to vector<8x128xf32>
    %61 = vector.extract_strided_slice %57 {offsets = [0, 3], sizes = [8, 128], strides = [1, 1]} : vector<8x132xf32> to vector<8x128xf32>
    %62 = vector.extract_strided_slice %57 {offsets = [0, 4], sizes = [8, 128], strides = [1, 1]} : vector<8x132xf32> to vector<8x128xf32>
    %63 = tpu.concatenate %58, %59, %60, %61, %62 in 0 : vector<8x128xf32>, vector<8x128xf32>, vector<8x128xf32>, vector<8x128xf32>, vector<8x128xf32> -> vector<40x128xf32>
    %cst_23 = arith.constant dense<0.000000e+00> : vector<16x128xf32>
    %64 = tpu.matmul %54, %63, %cst_23 {dimension_numbers = #tpu.dot_dimension_numbers<[1], [0], [0], [1], [0, 0, 1, 1], [], []>} : vector<16x40xf32>, vector<40x128xf32>, vector<16x128xf32> -> vector<16x128xf32>
    %65 = vector.broadcast %55 : vector<16x1xf32> to vector<16x128xf32>
    %66 = arith.addf %64, %65 : vector<16x128xf32>
    %cst_24 = arith.constant 0.000000e+00 : f32
    %67 = vector.broadcast %cst_24 : f32 to vector<16x128xf32>
    %68 = arith.maximumf %66, %67 : vector<16x128xf32>
    %cst_25 = arith.constant 0.000000e+00 : f32
    %69 = vector.shape_cast %4 : vector<1x128xi1> to vector<1x128xi1>
    %70 = vector.broadcast %69 : vector<1x128xi1> to vector<16x128xi1>
    %71 = vector.broadcast %cst_25 : f32 to vector<16x128xf32>
    %72 = arith.select %70, %68, %71 : vector<16x128xi1>, vector<16x128xf32>
    %c0_26 = arith.constant 0 : index
    %c0_27 = arith.constant 0 : index
    %73 = vector.load %arg6[%c0_26, %c0_27] : memref<16x80xf32, #tpu.memory_space<vmem>>, vector<16x80xf32>
    %c0_28 = arith.constant 0 : index
    %c0_29 = arith.constant 0 : index
    %74 = vector.load %arg7[%c0_28, %c0_29] : memref<16x1xf32, #tpu.memory_space<vmem>>, vector<16x1xf32>
    %cst_30 = arith.constant 0.000000e+00 : f32
    %75 = vector.broadcast %cst_30 : f32 to vector<16x2xf32>
    %76 = tpu.concatenate %75, %72, %75 in 1 : vector<16x2xf32>, vector<16x128xf32>, vector<16x2xf32> -> vector<16x132xf32>
    %77 = vector.extract_strided_slice %76 {offsets = [0, 0], sizes = [16, 128], strides = [1, 1]} : vector<16x132xf32> to vector<16x128xf32>
    %78 = vector.extract_strided_slice %76 {offsets = [0, 1], sizes = [16, 128], strides = [1, 1]} : vector<16x132xf32> to vector<16x128xf32>
    %79 = vector.extract_strided_slice %76 {offsets = [0, 2], sizes = [16, 128], strides = [1, 1]} : vector<16x132xf32> to vector<16x128xf32>
    %80 = vector.extract_strided_slice %76 {offsets = [0, 3], sizes = [16, 128], strides = [1, 1]} : vector<16x132xf32> to vector<16x128xf32>
    %81 = vector.extract_strided_slice %76 {offsets = [0, 4], sizes = [16, 128], strides = [1, 1]} : vector<16x132xf32> to vector<16x128xf32>
    %82 = tpu.concatenate %77, %78, %79, %80, %81 in 0 : vector<16x128xf32>, vector<16x128xf32>, vector<16x128xf32>, vector<16x128xf32>, vector<16x128xf32> -> vector<80x128xf32>
    %cst_31 = arith.constant dense<0.000000e+00> : vector<16x128xf32>
    %83 = tpu.matmul %73, %82, %cst_31 {dimension_numbers = #tpu.dot_dimension_numbers<[1], [0], [0], [1], [0, 0, 1, 1], [], []>} : vector<16x80xf32>, vector<80x128xf32>, vector<16x128xf32> -> vector<16x128xf32>
    %84 = vector.broadcast %74 : vector<16x1xf32> to vector<16x128xf32>
    %85 = arith.addf %83, %84 : vector<16x128xf32>
    %cst_32 = arith.constant 0.000000e+00 : f32
    %86 = vector.broadcast %cst_32 : f32 to vector<16x128xf32>
    %87 = arith.maximumf %85, %86 : vector<16x128xf32>
    %cst_33 = arith.constant 0.000000e+00 : f32
    %88 = vector.shape_cast %4 : vector<1x128xi1> to vector<1x128xi1>
    %89 = vector.broadcast %88 : vector<1x128xi1> to vector<16x128xi1>
    %90 = vector.broadcast %cst_33 : f32 to vector<16x128xf32>
    %91 = arith.select %89, %87, %90 : vector<16x128xi1>, vector<16x128xf32>
    %c0_34 = arith.constant 0 : index
    %c0_35 = arith.constant 0 : index
    %92 = vector.load %arg8[%c0_34, %c0_35] : memref<8x80xf32, #tpu.memory_space<vmem>>, vector<8x80xf32>
    %c0_36 = arith.constant 0 : index
    %c0_37 = arith.constant 0 : index
    %93 = vector.load %arg9[%c0_36, %c0_37] : memref<8x1xf32, #tpu.memory_space<vmem>>, vector<8x1xf32>
    %cst_38 = arith.constant 0.000000e+00 : f32
    %94 = vector.broadcast %cst_38 : f32 to vector<16x2xf32>
    %95 = tpu.concatenate %94, %91, %94 in 1 : vector<16x2xf32>, vector<16x128xf32>, vector<16x2xf32> -> vector<16x132xf32>
    %96 = vector.extract_strided_slice %95 {offsets = [0, 0], sizes = [16, 128], strides = [1, 1]} : vector<16x132xf32> to vector<16x128xf32>
    %97 = vector.extract_strided_slice %95 {offsets = [0, 1], sizes = [16, 128], strides = [1, 1]} : vector<16x132xf32> to vector<16x128xf32>
    %98 = vector.extract_strided_slice %95 {offsets = [0, 2], sizes = [16, 128], strides = [1, 1]} : vector<16x132xf32> to vector<16x128xf32>
    %99 = vector.extract_strided_slice %95 {offsets = [0, 3], sizes = [16, 128], strides = [1, 1]} : vector<16x132xf32> to vector<16x128xf32>
    %100 = vector.extract_strided_slice %95 {offsets = [0, 4], sizes = [16, 128], strides = [1, 1]} : vector<16x132xf32> to vector<16x128xf32>
    %101 = tpu.concatenate %96, %97, %98, %99, %100 in 0 : vector<16x128xf32>, vector<16x128xf32>, vector<16x128xf32>, vector<16x128xf32>, vector<16x128xf32> -> vector<80x128xf32>
    %cst_39 = arith.constant dense<0.000000e+00> : vector<8x128xf32>
    %102 = tpu.matmul %92, %101, %cst_39 {dimension_numbers = #tpu.dot_dimension_numbers<[1], [0], [0], [1], [0, 0, 1, 1], [], []>} : vector<8x80xf32>, vector<80x128xf32>, vector<8x128xf32> -> vector<8x128xf32>
    %103 = vector.broadcast %93 : vector<8x1xf32> to vector<8x128xf32>
    %104 = arith.addf %102, %103 : vector<8x128xf32>
    %cst_40 = arith.constant 0.000000e+00 : f32
    %105 = vector.shape_cast %4 : vector<1x128xi1> to vector<1x128xi1>
    %106 = vector.broadcast %105 : vector<1x128xi1> to vector<8x128xi1>
    %107 = vector.broadcast %cst_40 : f32 to vector<8x128xf32>
    %108 = arith.select %106, %104, %107 : vector<8x128xi1>, vector<8x128xf32>
    %c0_41 = arith.constant 0 : index
    %c0_42 = arith.constant 0 : index
    %c0_43 = arith.constant 0 : index
    %c0_44 = arith.constant 0 : index
    %109 = vector.load %arg16[%c0_41, %c0_42, %c0_43, %c0_44] : memref<1x8x1x1xf32, #tpu.memory_space<vmem>>, vector<1x8x1x1xf32>
    %110 = vector.shape_cast %109 : vector<1x8x1x1xf32> to vector<8x1x1xf32>
    %c0_45 = arith.constant 0 : index
    %c0_46 = arith.constant 0 : index
    %c0_47 = arith.constant 0 : index
    %111 = vector.load %arg13[%c0_45, %c0_46, %c0_47] : memref<1x1x128xf32, #tpu.memory_space<vmem>>, vector<1x1x128xf32>
    %112 = vector.broadcast %110 : vector<8x1x1xf32> to vector<8x1x128xf32>
    %113 = vector.broadcast %111 : vector<1x1x128xf32> to vector<8x1x128xf32>
    %114 = arith.subf %112, %113 : vector<8x1x128xf32>
    %115 = arith.mulf %114, %114 : vector<8x1x128xf32>
    %cst_48 = arith.constant -5.000000e-01 : f32
    %116 = vector.broadcast %cst_48 : f32 to vector<8x1x128xf32>
    %117 = arith.mulf %116, %115 : vector<8x1x128xf32>
    %c0_49 = arith.constant 0 : index
    %c0_50 = arith.constant 0 : index
    %c0_51 = arith.constant 0 : index
    %118 = vector.load %arg10[%c0_49, %c0_50, %c0_51] : memref<1x16x1xf32, #tpu.memory_space<vmem>>, vector<1x16x1xf32>
    %119 = vector.broadcast %117 : vector<8x1x128xf32> to vector<8x16x128xf32>
    %120 = vector.broadcast %118 : vector<1x16x1xf32> to vector<8x16x128xf32>
    %121 = arith.mulf %119, %120 : vector<8x16x128xf32>
    %122 = math.exp %121 : vector<8x16x128xf32>
    %c0_52 = arith.constant 0 : index
    %c0_53 = arith.constant 0 : index
    %123 = vector.load %arg11[%c0_52, %c0_53] : memref<16x1xf32, #tpu.memory_space<vmem>>, vector<16x1xf32>
    %124 = tpu.concatenate %108, %108 in 0 : vector<8x128xf32>, vector<8x128xf32> -> vector<16x128xf32>
    %125 = vector.broadcast %123 : vector<16x1xf32> to vector<16x128xf32>
    %126 = arith.mulf %125, %124 : vector<16x128xf32>
    %127 = vector.shape_cast %126 : vector<16x128xf32> to vector<1x16x128xf32>
    %128 = vector.broadcast %127 : vector<1x16x128xf32> to vector<8x16x128xf32>
    %129 = arith.mulf %122, %128 : vector<8x16x128xf32>
    %cst_54 = arith.constant dense<0.000000e+00> : vector<8x16xf32>
    %130 = vector.multi_reduction <add>, %129, %cst_54 [2] : vector<8x16x128xf32> to vector<8x16xf32>
    %131 = vector.shape_cast %130 : vector<8x16xf32> to vector<8x16x1xf32>
    %132 = vector.extract_strided_slice %131 {offsets = [0, 0, 0], sizes = [8, 8, 1], strides = [1, 1, 1]} : vector<8x16x1xf32> to vector<8x8x1xf32>
    %cst_55 = arith.constant dense<0.000000e+00> : vector<8x1xf32>
    %133 = vector.multi_reduction <add>, %132, %cst_55 [1] : vector<8x8x1xf32> to vector<8x1xf32>
    %134 = vector.shape_cast %133 : vector<8x1xf32> to vector<8x1x1xf32>
    %c0_56 = arith.constant 0 : index
    %135 = memref.load %arg12[%c0_56] : memref<2xf32, #tpu.memory_space<smem>>
    %136 = vector.broadcast %135 : f32 to vector<8x1x1xf32>
    %137 = arith.addf %134, %136 : vector<8x1x1xf32>
    %138 = vector.extract_strided_slice %131 {offsets = [0, 8, 0], sizes = [8, 8, 1], strides = [1, 1, 1]} : vector<8x16x1xf32> to vector<8x8x1xf32>
    %cst_57 = arith.constant dense<0.000000e+00> : vector<8x1xf32>
    %139 = vector.multi_reduction <add>, %138, %cst_57 [1] : vector<8x8x1xf32> to vector<8x1xf32>
    %140 = vector.shape_cast %139 : vector<8x1xf32> to vector<8x1x1xf32>
    %c1_58 = arith.constant 1 : index
    %141 = memref.load %arg12[%c1_58] : memref<2xf32, #tpu.memory_space<smem>>
    %142 = vector.broadcast %141 : f32 to vector<8x1x1xf32>
    %143 = arith.addf %140, %142 : vector<8x1x1xf32>
    %cst_59 = arith.constant 0.000000e+00 : f32
    %144 = vector.broadcast %cst_59 : f32 to vector<8x1x1xf32>
    %145 = arith.maximumf %143, %144 : vector<8x1x1xf32>
    %146 = vector.broadcast %cst_59 : f32 to vector<8x1x1xf32>
    %147 = arith.subf %143, %146 : vector<8x1x1xf32>
    %148 = arith.cmpf one, %147, %147 : vector<8x1x1xf32>
    %149 = vector.broadcast %cst_59 : f32 to vector<8x1x1xf32>
    %150 = arith.addf %143, %149 : vector<8x1x1xf32>
    %151 = math.absf %147 : vector<8x1x1xf32>
    %cst_60 = arith.constant 0.000000e+00 : f32
    %152 = vector.broadcast %cst_60 : f32 to vector<8x1x1xf32>
    %153 = arith.subf %152, %151 : vector<8x1x1xf32>
    %154 = math.exp %153 : vector<8x1x1xf32>
    %155 = math.log1p %154 : vector<8x1x1xf32>
    %156 = arith.addf %145, %155 : vector<8x1x1xf32>
    %157 = arith.select %148, %150, %156 : vector<8x1x1xi1>, vector<8x1x1xf32>
    %158 = tpu.concatenate %137, %157 in 1 : vector<8x1x1xf32>, vector<8x1x1xf32> -> vector<8x2x1xf32>
    %c0_61 = arith.constant 0 : index
    %c0_62 = arith.constant 0 : index
    %c0_63 = arith.constant 0 : index
    %c0_64 = arith.constant 0 : index
    %159 = vector.load %arg17[%c0_61, %c0_62, %c0_63, %c0_64] : memref<1x8x2x1xf32, #tpu.memory_space<vmem>>, vector<1x8x2x1xf32>
    %160 = vector.shape_cast %159 : vector<1x8x2x1xf32> to vector<8x2x1xf32>
    %161 = vector.shape_cast %158 : vector<8x2x1xf32> to vector<1x8x2x1xf32>
    tpu.vector_store %arg17[%c0_61, %c0_62, %c0_63, %c0_64], %161 {strides = array<i32>} : memref<1x8x2x1xf32, #tpu.memory_space<vmem>>, vector<1x8x2x1xf32>,
    return
  }
  func.func @transform_0(%arg0: i32) -> i32 {
    %c0_i32 = arith.constant 0 : i32
    %c0_i32_0 = arith.constant 0 : i32
    return %c0_i32 : i32
  }
  func.func @transform_1(%arg0: i32) -> (i32, i32) {
    %c0_i32 = arith.constant 0 : i32
    %c0_i32_0 = arith.constant 0 : i32
    %c0_i32_1 = arith.constant 0 : i32
    return %c0_i32, %c0_i32_0 : i32, i32
  }
  func.func @transform_2(%arg0: i32) -> (i32, i32) {
    %c0_i32 = arith.constant 0 : i32
    %c0_i32_0 = arith.constant 0 : i32
    %c0_i32_1 = arith.constant 0 : i32
    return %c0_i32, %c0_i32_0 : i32, i32
  }
  func.func @transform_3(%arg0: i32) -> (i32, i32) {
    %c0_i32 = arith.constant 0 : i32
    %c0_i32_0 = arith.constant 0 : i32
    %c0_i32_1 = arith.constant 0 : i32
    return %c0_i32, %c0_i32_0 : i32, i32
  }
  func.func @transform_4(%arg0: i32) -> (i32, i32) {
    %c0_i32 = arith.constant 0 : i32
    %c0_i32_0 = arith.constant 0 : i32
    %c0_i32_1 = arith.constant 0 : i32
    return %c0_i32, %c0_i32_0 : i32, i32
  }
  func.func @transform_5(%arg0: i32) -> (i32, i32) {
    %c0_i32 = arith.constant 0 : i32
    %c0_i32_0 = arith.constant 0 : i32
    %c0_i32_1 = arith.constant 0 : i32
    return %c0_i32, %c0_i32_0 : i32, i32
  }
  func.func @transform_6(%arg0: i32) -> (i32, i32) {
    %c0_i32 = arith.constant 0 : i32
    %c0_i32_0 = arith.constant 0 : i32
    %c0_i32_1 = arith.constant 0 : i32
    return %c0_i32, %c0_i32_0 : i32, i32
  }
  func.func @transform_7(%arg0: i32) -> (i32, i32) {
    %c0_i32 = arith.constant 0 : i32
    %c0_i32_0 = arith.constant 0 : i32
    %c0_i32_1 = arith.constant 0 : i32
    return %c0_i32, %c0_i32_0 : i32, i32
  }
  func.func @transform_8(%arg0: i32) -> (i32, i32) {
    %c0_i32 = arith.constant 0 : i32
    %c0_i32_0 = arith.constant 0 : i32
    %c0_i32_1 = arith.constant 0 : i32
    return %c0_i32, %c0_i32_0 : i32, i32
  }
  func.func @transform_9(%arg0: i32) -> (i32, i32, i32) {
    %c0_i32 = arith.constant 0 : i32
    %c0_i32_0 = arith.constant 0 : i32
    %c0_i32_1 = arith.constant 0 : i32
    %c0_i32_2 = arith.constant 0 : i32
    return %c0_i32, %c0_i32_0, %c0_i32_1 : i32, i32, i32
  }
  func.func @transform_10(%arg0: i32) -> (i32, i32) {
    %c0_i32 = arith.constant 0 : i32
    %c0_i32_0 = arith.constant 0 : i32
    %c0_i32_1 = arith.constant 0 : i32
    return %c0_i32, %c0_i32_0 : i32, i32
  }
  func.func @transform_11(%arg0: i32) -> i32 {
    %c0_i32 = arith.constant 0 : i32
    %c0_i32_0 = arith.constant 0 : i32
    return %c0_i32 : i32
  }
  func.func @transform_12(%arg0: i32) -> (i32, i32, i32) {
    %c0_i32 = arith.constant 0 : i32
    %c0_i32_0 = arith.constant 0 : i32
    %c0_i32_1 = arith.constant 0 : i32
    %c0_i32_2 = arith.constant 0 : i32
    return %c0_i32, %c0_i32_0, %c0_i32_1 : i32, i32, i32
  }
  func.func @transform_13(%arg0: i32) -> (i32, i32, i32) {
    %c0_i32 = arith.constant 0 : i32
    %c0_i32_0 = arith.constant 0 : i32
    %c0_i32_1 = arith.constant 0 : i32
    return %arg0, %c0_i32, %c0_i32_0 : i32, i32, i32
  }
  func.func @transform_14(%arg0: i32) -> (i32, i32, i32) {
    %c0_i32 = arith.constant 0 : i32
    %c0_i32_0 = arith.constant 0 : i32
    %c0_i32_1 = arith.constant 0 : i32
    return %arg0, %c0_i32, %c0_i32_0 : i32, i32, i32
  }
  func.func @transform_15(%arg0: i32) -> (i32, i32, i32, i32) {
    %c0_i32 = arith.constant 0 : i32
    %c0_i32_0 = arith.constant 0 : i32
    %c0_i32_1 = arith.constant 0 : i32
    %c0_i32_2 = arith.constant 0 : i32
    return %arg0, %c0_i32, %c0_i32_0, %c0_i32_1 : i32, i32, i32, i32
  }
  func.func @transform_16(%arg0: i32) -> (i32, i32, i32, i32) {
    %c0_i32 = arith.constant 0 : i32
    %c0_i32_0 = arith.constant 0 : i32
    %c0_i32_1 = arith.constant 0 : i32
    %c0_i32_2 = arith.constant 0 : i32
    return %arg0, %c0_i32, %c0_i32_0, %c0_i32_1 : i32, i32, i32, i32
  }
}

</mosaic_0001>

<bundles_post_ra>
// kernel: _forward_impl.1
= control target key start
LH: loop header
LB: loop body
LE: loop exit
PB: predicated region body
PF: predicated region fallthrough
CT: control target
= control target key end

     0   :  { %s2732_s0 = inlined_call_operand.vmem [shape: f32[2], index: 0, kind: input, shape index: {}]   ;;  %s2733_s1 = inlined_call_operand.vmem [shape: f32[8,2], index: 1, kind: input, shape index: {}]   ;;  %s2734_s2 = inlined_call_operand.vmem [shape: f32[8,1], index: 2, kind: input, shape index: {}]   ;;  %s2735_s3 = inlined_call_operand.vmem [shape: f32[16,40], index: 3, kind: input, shape index: {}]   ;;  %s2736_s4 = inlined_call_operand.vmem [shape: f32[16,1], index: 4, kind: input, shape index: {}]   ;;  %s2737_s5 = inlined_call_operand.vmem [shape: f32[16,80], index: 5, kind: input, shape index: {}]   ;;  %s2738_s6 = inlined_call_operand.vmem [shape: f32[16,1], index: 6, kind: input, shape index: {}]   ;;  %s2739_s7 = inlined_call_operand.vmem [shape: f32[8,80], index: 7, kind: input, shape index: {}]   ;;  %s2740_s8 = inlined_call_operand.vmem [shape: f32[8,1], index: 8, kind: input, shape index: {}]   ;;  %s2741_s9 = inlined_call_operand.vmem [shape: f32[1,16,1], index: 9, kind: input, shape index: {}]   ;;  %s2742_s10 = inlined_call_operand.vmem [shape: f32[16,1], index: 10, kind: input, shape index: {}]   ;;  %s2743_s11 = inlined_call_operand.vmem [shape: f32[2], index: 11, kind: input, shape index: {}]   ;;  %s2744_s12 = inlined_call_operand.vmem [shape: f32[1,1,128], index: 12, kind: input, shape index: {}]   ;;  %s2745_s13 = inlined_call_operand.vmem [shape: f32[2,8,1], index: 13, kind: input, shape index: {}]   ;;  %s2746_s14 = inlined_call_operand.vmem [shape: f32[2,8,1], index: 14, kind: input, shape index: {}]   ;;  %s2747_s15 = inlined_call_operand.vmem [shape: f32[2,8,1,1], index: 15, kind: input, shape index: {}]   ;;  %s2748_s16 = inlined_call_operand.vmem [shape: f32[2,8,2,1], index: 16, kind: output, shape index: {}]  }
   0x1   :  { %2751 = sst [smem:[#allocation8_spill]] %s2732_s0 }
   0x2   :  { %21 = vsyncpa [#allocation3], 0 }
   0x3   :  { %22 = vsyncpa [#allocation5], 0  ;;  %s2298_s21 = smov 0  }
   0x4 LB: > { %s2304_s22 = sadd.s32 4294967295, %s2198_s21   ;;  %p1761_p0 = scmp.ge.s32.totalorder %s2198_s21, 1  ;;  %s2198_s21 = sphi %s2298_s21, %s28_s21  }
   0x5   : > { %p410_p1 = scmp.lt.s32.totalorder %s2198_s21, 3  ;;  %s2752_s25 = sld [smem:[#allocation8_spill]] }
   0x6   : > { %p2749_p3 = scmp.eq.s32.totalorder %s2304_s22, 0  ;;  %s464_s30 = sshll.u32 %s2743_s11, 4  ;;  %s465_s30 = int_to_ptr.vmem [resolvable:$true] %s464_s30 }
   0x7   : > { %p2311_p2 = pnand %p1761_p0, %p410_p1 }
   0x9   : > { %s2753_s27 = scalar_select %p2311_p2, 1, 0 }
   0xa   : > { %p1939_p4 = pneg %p2311_p2 }
   0xb   : > { %s423_s26 = sshll.u32 %s2752_s25, 4  ;;  %s424_s26 = int_to_ptr.vmem [resolvable:$true] %s423_s26 }
   0xc   : > { %p2323_p5 = pnand %p2749_p3, %p1939_p4  ;;  %s2154_s17 = scalar_lea.vmem %s424_s26, 16 }
   0xd   : > { %p2155_p6 = scmp.ne.s32.totalorder %s424_s26, %s2154_s17  ;;  %p2162_p10 = scmp.lt.s32.totalorder %s424_s26, %s424_s26 }
   0xe   : > { %p2156_p7 = pneg %p2323_p5  ;;  %p2163_p11 = scmp.lt.s32.totalorder %s2154_s17, %s2154_s17 }
  0x10   : > { %p2157_p8 = pnand %p2156_p7, %p2155_p6  ;;  %p2164_p12 = por %p2163_p11, %p2162_p10 }
  0x12   : > { %p2158_p9 = pneg %p2157_p8 }
  0x14   : > { %p2165_p13 = pnand %p2164_p12, %p2158_p9 }
  0x16   : > { %2168 = shalt.err (!%p2165_p13)
}
  0x17   : > { %s2200_s18 = smov [#allocation2]   ;;  %s2169_s19 = scalar_lea.vmem %s465_s30, 16 }
  0x18   : > { %1942 = dma.vmem_to_smem (!%p2323_p5), %s424_s26, 16, %s2200_s18, [#allocation3]  }
  0x19   : > { %p2170_p0 = scmp.ne.s32.totalorder %s465_s30, %s2169_s19  ;;  %p2177_p3 = scmp.lt.s32.totalorder %s465_s30, %s465_s30 }
  0x1a   : > { %p2178_p2 = scmp.lt.s32.totalorder %s2169_s19, %s2169_s19 }
  0x1b   : > { %p2172_p1 = pnand %p2170_p0, %p2156_p7 }
  0x1c   : > { %p2179_p6 = por %p2178_p2, %p2177_p3 }
  0x1d   : > { %p2173_p4 = pneg %p2172_p1 }
  0x1f   : > { %p2180_p8 = pnand %p2179_p6, %p2173_p4 }
  0x21   : > { %2183 = shalt.err (!%p2180_p8)
}
  0x22   : > { %s2201_s20 = smov [#allocation4]   ;;  %p2755_p9 = scmp.ne.s32.totalorder %s2753_s27, 0 }
  0x23   : > { %1945 = dma.vmem_to_smem (!%p2323_p5), %s465_s30, 16, %s2201_s20, [#allocation5]  }
  0x24   : > { %501 = sbr.rel (%p2755_p9) target bundleno = 1905 (0x771), region = 84  ;;  %p2756_p10 = scmp.eq.s32.totalorder (!%p2755_p9), %s2304_s22, 0 }
  0x2b   : > { %2189 = dma.done.wait (%p2756_p10), [#allocation3], 16   ;;  %p2757_p11 = pmov %p2756_p10 }
  0x2c   : > { %p2758_p7 = pmov %p2756_p10 }
  0x2d   : > { %2191 = vsyncadd (%p2757_p11), [#allocation3], 4294967280 }
  0x2e   : > { %2193 = dma.done.wait (%p2758_p7), [#allocation5], 16   ;;  %p2759_p2 = pmov %p2758_p7 }
  0x30   : > { %2195 = vsyncadd (%p2759_p2), [#allocation5], 4294967280 }
  0x31   : > { %511 = sfence }
  0x32   : > { %p563_p3 = scmp.lt.s32.totalorder %s2304_s22, 1  ;;  %v631_v0 = vld [vmem:[%s2733_s1] sm:$0xff]  ;;  %v2202_v1 = vmov 0   ;;  %v2203_v3 = vmov 1   ;;  %v581_v6 = vlaneseq  ;;  %s600_s23 = sld [smem:[#allocation2]]  ;;  %vm668_vm1 = vcmask 15360  }
  0x33   : > { %1971 = vset.pattern.permute.xlu0 %v2202_v1  ;;  %1972 = vset.pattern.permute.xlu1 %v2202_v1  ;;  %v644_v5 = vld [vmem:[%s2734_s2] sm:$0xff]  ;;  %s1773_s24 = sld [smem:[#allocation2 + $0x1]]  ;;  %s2204_s26 = smov 2   ;;  %vm711_vm2 = vcmask 326656   ;;  %v663_v58 = vld [vmem:[%s2736_s4 + $0x8] sm:$0xff]  ;;  %vm677_vm3 = vcmask 1039360   ;;  %vm2397_vm4 = vmneg %vm668_vm1 }
  0x34   : > { %s2773_s22 = smov (!%p563_p3, %s2304_s22), 1  ;;  %634 = vperm.xlu1 %1972, %v631_v0   ;;  %v593_v7 = vshrl.u32 %v581_v6, 7  ;;  %v2369_v9 = vld [vmem:[%s2744_s12] sm:$0x1]  ;;  %v2373_v50 = vand.u32 127, %v581_v6  ;;  %s2205_s27 = smov 126   ;;  %vm2423_vm10 = vmpackc.low %vm2397_vm4, %vm2397_vm4 }
  0x35   : > { %s2351_s25 = sshll.u32 %s2773_s22, 3  ;;  %v660_v57 = vld [vmem:[%s2735_s3] sm:$0xff]  ;;  %s2208_s17 = smov 125   ;;  %vm2209_vm5 = vmmov 1   ;;  %vm684_vm7 = vcmask 1031168   ;;  %vm691_vm8 = vcmask 1022976  }
  0x36   : > { %s566_s28 = scalar_lea.vmem %s2745_s13, %s2351_s25  ;;  %s570_s0 = scalar_lea.vmem %s2746_s14, %s2351_s25  ;;  %v2364_v8 = vsub.s32 0, %v593_v7  ;;  %vm583_vm0 = vcmp.lt.s32.totalorder %v2373_v50, 68  ;;  %1834 = vmatprep.mubr.msk.f32.mxu0 %vm711_vm2, %v660_v57  ;;  %v662_v59 = vld [vmem:[%s2736_s4] sm:$0xff]  ;;  %vm1884_vm6 = vmpackc.low %vm2209_vm5, %vm2397_vm4  ;;  %vm698_vm9 = vcmask 1014784   ;;  %vm875_vm11 = vcmask 654336  }
  0x37   : > { %v584_v2 = vld [vmem:[%s566_s28] sm:$0xff]  ;;  %s2206_s28 = smov 127   ;;  %vm2211_vm12 = vmmov 0   ;;  %s574_s19 = scalar_lea.vmem %s2747_s15, %s2351_s25 }
  0x38   : > { %1973 = vset.pattern.permute.xlu1 %v2203_v3  ;;  %588 = vperm.xlu0 %1971, %v584_v2   ;;  %v585_v4 = vld [vmem:[%s570_s0] sm:$0xff]  ;;  %v595_v10 = vrot.slane %v2369_v9, %v2364_v8  ;;  %v601_v14 = vstv %s600_s23  ;;  %s2207_s0 = smov 124   ;;  %s1428_s25 = sld [smem:[#allocation4]] }
  0x39   : > { %639 = vperm.xlu1 %1973, %v631_v0   ;;  %v606_v15 = vstv %s1773_s24 }
  0x3c   : > { %618 = vperm.xlu0 %1971, %v585_v4  }
  0x3d   : > { %1989 = vset.pattern.permute.xlu1 %v2202_v1 }
  0x40   : > { %647 = vperm.xlu0 %1971, %v644_v5  }
  0xb3   : > { %v635_v37 = vpop.permute.xlu1 %634 }
  0xb7   : > { %v589_v11 = vpop.permute.xlu0 %588 }
  0xb8   : > { %v597_v12 = vsub.f32 %v589_v11, %v595_v10  ;;  %v640_v40 = vpop.permute.xlu1 %639 }
  0xba   : > { %v598_v13 = vmul.f32 %v597_v12, %v597_v12 }
  0xbb   : > { %v619_v23 = vpop.permute.xlu0 %618 }
  0xbc   : > { %v599_v16 = vmul.f32 -0.5, %v598_v13 }
  0xbe   : > { %v602_v17 = vmul.f32 %v601_v14, %v599_v16  ;;  %v607_v18 = vmul.f32 %v606_v15, %v599_v16  ;;  %v661_v16 = vld [vmem:[%s2735_s3 + $0x8] sm:$0xff] }
  0xbf   : > { %v648_v45 = vpop.permute.xlu0 %647 }
  0xc0   : > { %v603_v19 = vmul.f32 1.442695, %v602_v17  ;;  %v608_v20 = vmul.f32 1.442695, %v607_v18 }
  0xc2   : > { %2080 = vpow2.f32 %v603_v19 }
  0xc3   : > { %2082 = vpow2.f32 %v608_v20 }
  0xcc   : > { %v2081_v21 = vpop.eup %2080 }
  0xcd   : > { %v2083_v22 = vpop.eup %2082  ;;  %v610_v24 = vrot.slane %v2081_v21, 4 }
  0xce   : > { %v621_v25 = vmul.f32 %v2083_v22, %v619_v23 }
  0xcf   : > { %v611_v26 = vadd.f32 %v2081_v21, %v610_v24 }
  0xd0   : > { %v622_v27 = vrot.slane %v621_v25, 4 }
  0xd1   : > { %v612_v28 = vrot.slane %v611_v26, 2 }
  0xd2   : > { %v623_v30 = vadd.f32 %v622_v27, %v621_v25 }
  0xd3   : > { %v613_v29 = vadd.f32 %v612_v28, %v611_v26 }
  0xd4   : > { %v624_v33 = vrot.slane %v623_v30, 2 }
  0xd5   : > { %v614_v31 = vrot.slane %v613_v29, 1 }
  0xd6   : > { %v625_v35 = vadd.f32 %v624_v33, %v623_v30 }
  0xd7   : > { %v615_v32 = vadd.f32 %v614_v31, %v613_v29 }
  0xd8   : > { %v626_v36 = vrot.slane %v625_v35, 1 }
  0xd9   : > { %v628_v34 = vadd.f32 1e-08, %v615_v32  ;;  %v637_v42 = vmul.f32 %v635_v37, %v615_v32 }
  0xda   : > { %v627_v38 = vadd.f32 %v626_v36, %v625_v35  ;;  %v1107_v35 = vld [vmem:[%s574_s19 + $0x1] sm:$0x1] }
  0xdb   : > { %2084 = vrcp.f32 %v628_v34 }
  0xe5   : > { %v2085_v39 = vpop.eup %2084 }
  0xe6   : > { %v630_v41 = vmul.f32 %v2085_v39, %v627_v38  ;;  %v797_v39 = vld [vmem:[%s2737_s5] sm:$0xff] }
  0xe7   : > { %1857 = vmatprep.mubr.msk.f32.mxu1 %vm875_vm11, %v797_v39 }
  0xe8   : > { %v642_v43 = vmul.f32 %v640_v40, %v630_v41  ;;  %v800_v40 = vld [vmem:[%s2738_s6 + $0x8] sm:$0xff]  ;;  %v799_v41 = vld [vmem:[%s2738_s6] sm:$0xff] }
  0xea   : > { %v643_v44 = vadd.f32 %v642_v43, %v637_v42 }
  0xec   : > { %v650_v46 = vadd.f32 %v648_v45, %v643_v44 }
  0xee   : > { %v1774_v47 = vmul.f32 -1.442695, %v650_v46 }
  0xf0   : > { %2086 = vpow2.f32 %v1774_v47 }
  0xfa   : > { %v2087_v48 = vpop.eup %2086 }
  0xfb   : > { %v654_v49 = vadd.f32 1.0, %v2087_v48 }
  0xfd   : > { %2088 = vrcp.f32 %v654_v49 }
 0x107   : > { %v2089_v51 = vpop.eup %2088 }
 0x108   : > { %v659_v52 = vsel %vm583_vm0, %v2089_v51, 0.0 }
 0x109   : > { %665 = vrot.lane.b32.xlu1 %v659_v52, %s2204_s26 }
 0x17b   : > { %v666_v53 = vpop.permute.xlu1 %665 }
 0x17c   : > { %v669_v54 = vsel %vm668_vm1, 0.0, %v666_v53  ;;  %v670_v55 = vsel %vm668_vm1, %v666_v53, 0.0 }
 0x17d   : > { %v1979_v56 = vpack.i.bf16 %v670_v55, %v669_v54 }
 0x17f   : > { %1980 = vrot.lane.b32.xlu1 %v1979_v56, %s2205_s27  ;;  %1975 = vrot.lane.b32.xlu0 %v1979_v56, %s2206_s28 }
 0x183   : > { %694 = vrot.lane.b32.xlu1 %v669_v54, %s2207_s0  ;;  %1985 = vrot.lane.b32.xlu0 %v1979_v56, %s2208_s17 }
 0x187   : > { %696 = vrot.lane.b32.xlu0 %v670_v55, %s2207_s0  ;;  %703 = vperm.xlu1 %1989, %v662_v59  }
 0x18b   : > { %708 = vperm.xlu0 %1971, %v663_v58  }
 0x1f1   : > { %v1981_v60 = vpop.permute.xlu1 %1980  ;;  %v1976_v61 = vpop.permute.xlu0 %1975 }
 0x1f2   : > { %v1978_v63 = vunpack.i.h.bf16 %v1976_v61  ;;  %v1977_v0 = vunpack.i.l.bf16 %v1976_v61  ;;  %v1983_v1 = vunpack.i.h.bf16 %v1981_v60  ;;  %v1982_v2 = vunpack.i.l.bf16 %v1981_v60 }
 0x1f4   : > { %v678_v3 = vsel %vm677_vm3, %v1977_v0, %v1978_v63  ;;  %v685_v10 = vsel %vm684_vm7, %v1982_v2, %v1983_v1 }
 0x1f5   : > { %v1986_v4 = vpop.permute.xlu0 %1985  ;;  %v1883_v5 = vpack.c.bf16 %v678_v3, %v666_v53  ;;  %v695_v14 = vpop.permute.xlu1 %694 }
 0x1f6   : > { %v1988_v6 = vunpack.i.h.bf16 %v1986_v4  ;;  %v1987_v7 = vunpack.i.l.bf16 %v1986_v4 }
 0x1f7   : > { %1885 = vmatprep.subr.msk.bf16.mxu0 %vm1884_vm6, %v1883_v5 }
 0x1f8   : > { %1888 = vmatpush3.bf16.msk.msra.mxu0 %vm1884_vm6, %v1883_v5  ;;  %v692_v11 = vsel %vm691_vm8, %v1987_v7, %v1988_v6 }
 0x1f9   : > { %v697_v12 = vpop.permute.xlu0 %696  ;;  %v1889_v13 = vpack.c.bf16 %v692_v11, %v685_v10 }
 0x1fa   : > { %v699_v15 = vsel %vm698_vm9, %v695_v14, %v697_v12 }
 0x1fb   : > { %1890 = vmatprep.subr.bf16.mxu0 %v1889_v13 }
 0x1fc   : > { %1892 = vmatpush3.bf16.msra.mxu0 %v1889_v13 }
 0x1fd   : > { %1832 = vmatprep.subr.mxu0 %v699_v15 }
 0x200   : > { %1833 = vmatpush3.msra.mxu0 %v699_v15 }
 0x201   : > { %1835 = vmatmul.mubr.msk.f32.vlgmr.msra.gmra.mrb[0].mxu0 %vm711_vm2, %v661_v16 }
 0x206   : > { %v704_v17 = vpop.permute.xlu1 %703 }
 0x20a   : > { %v709_v18 = vpop.permute.xlu0 %708 }
 0x2d4   : > { %v1836_v19 = vpop.f32.mrb[0].mxu0 }
 0x2d5   : > { %v790_v20 = vadd.f32 %v1836_v19, %v709_v18  ;;  %v784_v21 = vpop.f32.mrb[1].mxu0 }
 0x2d6   : > { %v785_v22 = vadd.f32 %v784_v21, %v704_v17  ;;  %v798_v17 = vld [vmem:[%s2737_s5 + $0x8] sm:$0xff] }
 0x2d7   : > { %v794_v23 = vmax.f32 %v790_v20, 0.0  ;;  %v2210_v20 = vmov 0.0|0.0  }
 0x2d8   : > { %v793_v24 = vmax.f32 %v785_v22, 0.0  ;;  %1915 = vmatprep.subr.bf16.mxu0 %v2210_v20 }
 0x2d9   : > { %v796_v25 = vsel %vm583_vm0, %v794_v23, 0.0 }
 0x2da   : > { %v795_v26 = vsel %vm583_vm0, %v793_v24, 0.0 }
 0x2db   : > { %v1990_v27 = vpack.i.bf16 %v796_v25, %v795_v26 }
 0x2dd   : > { %1991 = vrot.lane.b32.xlu1 %v1990_v27, %s2204_s26 }
 0x34f   : > { %v1992_v28 = vpop.permute.xlu1 %1991 }
 0x350   : > { %v1994_v29 = vunpack.i.h.bf16 %v1992_v28  ;;  %v1993_v30 = vunpack.i.l.bf16 %v1992_v28 }
 0x352   : > { %v810_v31 = vsel %vm668_vm1, 0.0, %v1994_v29  ;;  %v812_v32 = vsel %vm668_vm1, %v1994_v29, 0.0  ;;  %v809_v33 = vsel %vm668_vm1, 0.0, %v1993_v30  ;;  %v811_v34 = vsel %vm668_vm1, %v1993_v30, 0.0 }
 0x353   : > { %v1893_v36 = vpack.c.bf16 %v1994_v29, %v1993_v30  ;;  %v1995_v37 = vpack.i.bf16 %v812_v32, %v810_v31  ;;  %v2010_v38 = vpack.i.bf16 %v811_v34, %v809_v33 }
 0x355   : > { %1895 = vmatprep.subr.msk.bf16.mxu1 %vm2423_vm10, %v1893_v36  ;;  %1996 = vrot.lane.b32.xlu1 %v1995_v37, %s2206_s28 }
 0x356   : > { %1898 = vmatpush3.bf16.msk.msra.mxu1 %vm2423_vm10, %v1893_v36  ;;  %2011 = vrot.lane.b32.xlu0 %v2010_v38, %s2206_s28 }
 0x359   : > { %2001 = vrot.lane.b32.xlu1 %v1995_v37, %s2205_s27 }
 0x35a   : > { %2016 = vrot.lane.b32.xlu0 %v2010_v38, %s2205_s27 }
 0x35d   : > { %2006 = vrot.lane.b32.xlu1 %v1995_v37, %s2208_s17 }
 0x35e   : > { %2021 = vrot.lane.b32.xlu0 %v2010_v38, %s2208_s17 }
 0x361   : > { %2031 = vrot.lane.b32.xlu1 %v1995_v37, %s2207_s0 }
 0x362   : > { %2026 = vrot.lane.b32.xlu0 %v2010_v38, %s2207_s0 }
 0x365   : > { %872 = vperm.xlu1 %1989, %v800_v40  }
 0x366   : > { %867 = vperm.xlu0 %1971, %v799_v41   ;;  %v2212_v41 = vmov 0.0  }
 0x367   : > { %1880 = vmatprep.mubr.msk.f32.mxu0 %vm2211_vm12, %v2212_v41 }
 0x3c7   : > { %v1997_v42 = vpop.permute.xlu1 %1996 }
 0x3c8   : > { %v1999_v43 = vunpack.i.h.bf16 %v1997_v42  ;;  %v1998_v44 = vunpack.i.l.bf16 %v1997_v42  ;;  %v2012_v45 = vpop.permute.xlu0 %2011  ;;  %v1106_v42 = vld [vmem:[%s574_s19] sm:$0x1] }
 0x3c9   : > { %v2014_v46 = vunpack.i.h.bf16 %v2012_v45  ;;  %v2013_v47 = vunpack.i.l.bf16 %v2012_v45  ;;  %v1111_v45 = vld [vmem:[%s574_s19 + $0x5] sm:$0x1] }
 0x3ca   : > { %v826_v48 = vsel %vm677_vm3, %v1998_v44, %v1999_v43  ;;  %v1109_v43 = vld [vmem:[%s574_s19 + $0x3] sm:$0x1]  ;;  %v1108_v44 = vld [vmem:[%s574_s19 + $0x2] sm:$0x1] }
 0x3cb   : > { %v2002_v49 = vpop.permute.xlu1 %2001  ;;  %v825_v51 = vsel %vm677_vm3, %v2013_v47, %v2014_v46  ;;  %v1110_v46 = vld [vmem:[%s574_s19 + $0x4] sm:$0x1]  ;;  %v1113_v47 = vld [vmem:[%s574_s19 + $0x7] sm:$0x1] }
 0x3cc   : > { %v2004_v52 = vunpack.i.h.bf16 %v2002_v49  ;;  %v2003_v53 = vunpack.i.l.bf16 %v2002_v49  ;;  %v2017_v54 = vpop.permute.xlu0 %2016  ;;  %v1899_v55 = vpack.c.bf16 %v826_v48, %v825_v51  ;;  %v1112_v48 = vld [vmem:[%s574_s19 + $0x6] sm:$0x1]  ;;  %v1211_v51 = vld [vmem:[%s2741_s9 + $0x8] sm:$0xff]  ;;  %s1790_s19 = sld [smem:[#allocation4 + $0x1]] }
 0x3cd   : > { %v2019_v56 = vunpack.i.h.bf16 %v2017_v54  ;;  %v2018_v57 = vunpack.i.l.bf16 %v2017_v54  ;;  %v962_v49 = vld [vmem:[%s2740_s8] sm:$0xff] }
 0x3ce   : > { %1900 = vmatprep.subr.bf16.mxu1 %v1899_v55  ;;  %v838_v58 = vsel %vm684_vm7, %v2003_v53, %v2004_v52  ;;  %v1210_v52 = vld [vmem:[%s2741_s9] sm:$0xff]  ;;  %v1319_v53 = vld [vmem:[%s2742_s10 + $0x8] sm:$0xff] }
 0x3cf   : > { %1902 = vmatpush3.bf16.msra.mxu1 %v1899_v55  ;;  %v2007_v59 = vpop.permute.xlu1 %2006  ;;  %v837_v60 = vsel %vm684_vm7, %v2018_v57, %v2019_v56  ;;  %v1318_v54 = vld [vmem:[%s2742_s10] sm:$0xff] }
 0x3d0   : > { %v2009_v61 = vunpack.i.h.bf16 %v2007_v59  ;;  %v2008_v62 = vunpack.i.l.bf16 %v2007_v59  ;;  %v2022_v63 = vpop.permute.xlu0 %2021  ;;  %v1903_v0 = vpack.c.bf16 %v838_v58, %v837_v60 }
 0x3d1   : > { %v2024_v1 = vunpack.i.h.bf16 %v2022_v63  ;;  %v2023_v2 = vunpack.i.l.bf16 %v2022_v63 }
 0x3d2   : > { %1904 = vmatprep.subr.bf16.mxu1 %v1903_v0  ;;  %v850_v3 = vsel %vm691_vm8, %v2008_v62, %v2009_v61 }
 0x3d3   : > { %1906 = vmatpush3.bf16.msra.mxu1 %v1903_v0  ;;  %v2032_v4 = vpop.permute.xlu1 %2031  ;;  %v849_v5 = vsel %vm691_vm8, %v2023_v2, %v2024_v1 }
 0x3d4   : > { %v2034_v6 = vunpack.i.h.bf16 %v2032_v4  ;;  %v2033_v7 = vunpack.i.l.bf16 %v2032_v4  ;;  %v2027_v10 = vpop.permute.xlu0 %2026  ;;  %v1907_v11 = vpack.c.bf16 %v850_v3, %v849_v5 }
 0x3d5   : > { %v2029_v12 = vunpack.i.h.bf16 %v2027_v10  ;;  %v2028_v13 = vunpack.i.l.bf16 %v2027_v10 }
 0x3d6   : > { %1908 = vmatprep.subr.bf16.mxu1 %v1907_v11  ;;  %v862_v14 = vsel %vm698_vm9, %v2033_v7, %v2034_v6 }
 0x3d7   : > { %1910 = vmatpush3.bf16.msra.mxu1 %v1907_v11  ;;  %v861_v15 = vsel %vm698_vm9, %v2028_v13, %v2029_v12 }
 0x3d8   : > { %v1911_v16 = vpack.c.bf16 %v862_v14, %v861_v15 }
 0x3da   : > { %1912 = vmatprep.subr.bf16.mxu1 %v1911_v16 }
 0x3db   : > { %1914 = vmatpush3.bf16.msra.mxu1 %v1911_v16 }
 0x3de   : > { %1858 = vmatmul.mubr.msk.f32.vlgmr.msra.gmra.mrb[0].mxu1 %vm875_vm11, %v798_v17 }
 0x3e4   : > { %v873_v18 = vpop.permute.xlu1 %872 }
 0x3e5   : > { %v868_v21 = vpop.permute.xlu0 %867 }
 0x4b1   : > { %v1859_v19 = vpop.f32.mrb[0].mxu1 }
 0x4b2   : > { %v954_v22 = vadd.f32 %v1859_v19, %v873_v18  ;;  %v948_v23 = vpop.f32.mrb[1].mxu1 }
 0x4b3   : > { %v949_v24 = vadd.f32 %v948_v23, %v868_v21 }
 0x4b4   : > { %v958_v25 = vmax.f32 %v954_v22, 0.0 }
 0x4b5   : > { %v957_v26 = vmax.f32 %v949_v24, 0.0 }
 0x4b6   : > { %v960_v27 = vsel %vm583_vm0, %v958_v25, 0.0 }
 0x4b7   : > { %v959_v28 = vsel %vm583_vm0, %v957_v26, 0.0 }
 0x4b8   : > { %v2035_v29 = vpack.i.bf16 %v960_v27, %v959_v28 }
 0x4ba   : > { %2036 = vrot.lane.b32.xlu0 %v2035_v29, %s2204_s26 }
 0x52c   : > { %v2037_v30 = vpop.permute.xlu0 %2036 }
 0x52d   : > { %v2039_v31 = vunpack.i.h.bf16 %v2037_v30  ;;  %v2038_v32 = vunpack.i.l.bf16 %v2037_v30  ;;  %v961_v30 = vld [vmem:[%s2739_s7] sm:$0xff] }
 0x52f   : > { %v972_v33 = vsel %vm668_vm1, 0.0, %v2039_v31  ;;  %v974_v34 = vsel %vm668_vm1, %v2039_v31, 0.0  ;;  %v971_v36 = vsel %vm668_vm1, 0.0, %v2038_v32  ;;  %v973_v37 = vsel %vm668_vm1, %v2038_v32, 0.0 }
 0x530   : > { %v1916_v38 = vpack.c.bf16 %v2039_v31, %v2038_v32  ;;  %v2040_v39 = vpack.i.bf16 %v974_v34, %v972_v33  ;;  %v2055_v40 = vpack.i.bf16 %v973_v37, %v971_v36 }
 0x532   : > { %1918 = vmatpush3.bf16.msk.msra.mxu0 %vm2423_vm10, %v1916_v38  ;;  %2041 = vrot.lane.b32.xlu0 %v2040_v39, %s2206_s28 }
 0x533   : > { %2056 = vrot.lane.b32.xlu1 %v2055_v40, %s2206_s28  ;;  %1919 = vmatprep.subr.bf16.mxu0 %v2210_v20 }
 0x536   : > { %2046 = vrot.lane.b32.xlu0 %v2040_v39, %s2205_s27 }
 0x537   : > { %2061 = vrot.lane.b32.xlu1 %v2055_v40, %s2205_s27  ;;  %s1793_s27 = sshll.u32 %s2773_s22, 4 }
 0x53a   : > { %2051 = vrot.lane.b32.xlu0 %v2040_v39, %s2208_s17 }
 0x53b   : > { %2066 = vrot.lane.b32.xlu1 %v2055_v40, %s2208_s17 }
 0x53e   : > { %2076 = vrot.lane.b32.xlu0 %v2040_v39, %s2207_s0 }
 0x53f   : > { %2071 = vrot.lane.b32.xlu1 %v2055_v40, %s2207_s0  ;;  %s2644_s0 = scalar_lea.vmem %s2748_s16, %s1793_s27 }
 0x542   : > { %1125 = vperm.xlu0 %1971, %v1107_v35  }
 0x543   : > { %1116 = vperm.xlu1 %1989, %v1106_v42  }
 0x546   : > { %1143 = vperm.xlu0 %1971, %v1109_v43  }
 0x547   : > { %1134 = vperm.xlu1 %1989, %v1108_v44  }
 0x54a   : > { %1161 = vperm.xlu0 %1971, %v1111_v45  }
 0x54b   : > { %1152 = vperm.xlu1 %1989, %v1110_v46  }
 0x54e   : > { %1179 = vperm.xlu0 %1971, %v1113_v47  }
 0x54f   : > { %1170 = vperm.xlu1 %1989, %v1112_v48  }
 0x552   : > { %1029 = vperm.xlu0 %1971, %v962_v49  }
 0x553   : > { %1267 = vperm.xlu1 %1989, %v1211_v51  }
 0x556   : > { %1262 = vperm.xlu0 %1971, %v1210_v52  }
 0x557   : > { %1327 = vperm.xlu1 %1989, %v1319_v53  }
 0x55b   : > { %1322 = vperm.xlu1 %1989, %v1318_v54  }
 0x5a4   : > { %v2042_v55 = vpop.permute.xlu0 %2041 }
 0x5a5   : > { %v2044_v56 = vunpack.i.h.bf16 %v2042_v55  ;;  %v2043_v57 = vunpack.i.l.bf16 %v2042_v55  ;;  %v2057_v58 = vpop.permute.xlu1 %2056 }
 0x5a6   : > { %v2059_v59 = vunpack.i.h.bf16 %v2057_v58  ;;  %v2058_v60 = vunpack.i.l.bf16 %v2057_v58 }
 0x5a7   : > { %v988_v61 = vsel %vm677_vm3, %v2043_v57, %v2044_v56 }
 0x5a8   : > { %v987_v62 = vsel %vm677_vm3, %v2058_v60, %v2059_v59  ;;  %v2047_v63 = vpop.permute.xlu0 %2046  ;;  %vm1649_vm3 = vcmask 1024  }
 0x5a9   : > { %v1920_v0 = vpack.c.bf16 %v988_v61, %v987_v62  ;;  %v2049_v1 = vunpack.i.h.bf16 %v2047_v63  ;;  %v2048_v2 = vunpack.i.l.bf16 %v2047_v63  ;;  %v2062_v3 = vpop.permute.xlu1 %2061 }
 0x5aa   : > { %v2064_v4 = vunpack.i.h.bf16 %v2062_v3  ;;  %v2063_v5 = vunpack.i.l.bf16 %v2062_v3 }
 0x5ab   : > { %v1000_v6 = vsel %vm684_vm7, %v2048_v2, %v2049_v1  ;;  %1921 = vmatpush3.bf16.msra.mxu0 %v1920_v0 }
 0x5ac   : > { %v999_v7 = vsel %vm684_vm7, %v2063_v5, %v2064_v4  ;;  %v2052_v10 = vpop.permute.xlu0 %2051  ;;  %1922 = vmatprep.subr.bf16.mxu0 %v2210_v20 }
 0x5ad   : > { %v1923_v11 = vpack.c.bf16 %v1000_v6, %v999_v7  ;;  %v2054_v12 = vunpack.i.h.bf16 %v2052_v10  ;;  %v2053_v13 = vunpack.i.l.bf16 %v2052_v10  ;;  %v2067_v14 = vpop.permute.xlu1 %2066 }
 0x5ae   : > { %v2069_v15 = vunpack.i.h.bf16 %v2067_v14  ;;  %v2068_v16 = vunpack.i.l.bf16 %v2067_v14 }
 0x5af   : > { %v1012_v17 = vsel %vm691_vm8, %v2053_v13, %v2054_v12  ;;  %1924 = vmatpush3.bf16.msra.mxu0 %v1923_v11 }
 0x5b0   : > { %v1011_v18 = vsel %vm691_vm8, %v2068_v16, %v2069_v15  ;;  %v2077_v19 = vpop.permute.xlu0 %2076  ;;  %1925 = vmatprep.subr.bf16.mxu0 %v2210_v20 }
 0x5b1   : > { %v1926_v21 = vpack.c.bf16 %v1012_v17, %v1011_v18  ;;  %v2079_v22 = vunpack.i.h.bf16 %v2077_v19  ;;  %v2078_v23 = vunpack.i.l.bf16 %v2077_v19  ;;  %v2072_v24 = vpop.permute.xlu1 %2071 }
 0x5b2   : > { %v2074_v25 = vunpack.i.h.bf16 %v2072_v24  ;;  %v2073_v26 = vunpack.i.l.bf16 %v2072_v24 }
 0x5b3   : > { %v1024_v27 = vsel %vm698_vm9, %v2078_v23, %v2079_v22  ;;  %1927 = vmatpush3.bf16.msra.mxu0 %v1926_v21 }
 0x5b4   : > { %v1023_v28 = vsel %vm698_vm9, %v2073_v26, %v2074_v25  ;;  %1928 = vmatprep.subr.bf16.mxu0 %v2210_v20 }
 0x5b5   : > { %v1929_v29 = vpack.c.bf16 %v1024_v27, %v1023_v28 }
 0x5b7   : > { %1930 = vmatpush3.bf16.msra.mxu0 %v1929_v29 }
 0x5ba   : > { %1881 = vmatmul.mubr.msk.f32.vlgmr.msra.gmra.mrb[2].mxu0 %vm875_vm11, %v961_v30 }
 0x5c1   : > { %v1126_v33 = vpop.permute.xlu0 %1125 }
 0x5c2   : > { %v1117_v31 = vpop.permute.xlu1 %1116  ;;  %v1131_v37 = vrot.slane %v1126_v33, %v2364_v8 }
 0x5c3   : > { %v1122_v38 = vrot.slane %v1117_v31, %v2364_v8 }
 0x5c4   : > { %v1187_v20 = vsub.f32 %v1131_v37, %v2369_v9 }
 0x5c5   : > { %v1144_v36 = vpop.permute.xlu0 %1143  ;;  %v1186_v41 = vsub.f32 %v1122_v38, %v2369_v9 }
 0x5c6   : > { %v1135_v32 = vpop.permute.xlu1 %1134  ;;  %v1195_v45 = vmul.f32 %v1187_v20, %v1187_v20  ;;  %v1149_v46 = vrot.slane %v1144_v36, %v2364_v8 }
 0x5c7   : > { %v1140_v35 = vrot.slane %v1135_v32, %v2364_v8  ;;  %v1194_v47 = vmul.f32 %v1186_v41, %v1186_v41 }
 0x5c8   : > { %v1203_v54 = vmul.f32 -0.5, %v1195_v45  ;;  %v1189_v55 = vsub.f32 %v1149_v46, %v2369_v9 }
 0x5c9   : > { %v1162_v42 = vpop.permute.xlu0 %1161  ;;  %v1188_v48 = vsub.f32 %v1140_v35, %v2369_v9  ;;  %v1202_v56 = vmul.f32 -0.5, %v1194_v47 }
 0x5ca   : > { %v1153_v34 = vpop.permute.xlu1 %1152  ;;  %v1167_v49 = vrot.slane %v1162_v42, %v2364_v8  ;;  %v1227_v63 = vrot.slane %v1203_v54, %v2364_v8  ;;  %v1197_v0 = vmul.f32 %v1189_v55, %v1189_v55 }
 0x5cb   : > { %v1158_v39 = vrot.slane %v1153_v34, %v2364_v8  ;;  %v1196_v57 = vmul.f32 %v1188_v48, %v1188_v48  ;;  %v1223_v1 = vrot.slane %v1202_v56, %v2364_v8 }
 0x5cc   : > { %v1191_v58 = vsub.f32 %v1167_v49, %v2369_v9  ;;  %v1205_v11 = vmul.f32 -0.5, %v1197_v0 }
 0x5cd   : > { %v1190_v43 = vsub.f32 %v1158_v39, %v2369_v9  ;;  %v1180_v52 = vpop.permute.xlu0 %1179  ;;  %v1204_v2 = vmul.f32 -0.5, %v1196_v57 }
 0x5ce   : > { %v1171_v40 = vpop.permute.xlu1 %1170  ;;  %v1185_v60 = vrot.slane %v1180_v52, %v2364_v8  ;;  %v1199_v3 = vmul.f32 %v1191_v58, %v1191_v58  ;;  %v1235_v22 = vrot.slane %v1205_v11, %v2364_v8 }
 0x5cf   : > { %v1176_v44 = vrot.slane %v1171_v40, %v2364_v8  ;;  %v1198_v51 = vmul.f32 %v1190_v43, %v1190_v43  ;;  %v1231_v12 = vrot.slane %v1204_v2, %v2364_v8 }
 0x5d0   : > { %v1193_v5 = vsub.f32 %v1185_v60, %v2369_v9  ;;  %v1207_v13 = vmul.f32 -0.5, %v1199_v3 }
 0x5d1   : > { %v1192_v53 = vsub.f32 %v1176_v44, %v2369_v9  ;;  %v1206_v59 = vmul.f32 -0.5, %v1198_v51  ;;  %v1030_v15 = vpop.permute.xlu0 %1029 }
 0x5d2   : > { %v1268_v62 = vpop.permute.xlu1 %1267  ;;  %v1201_v14 = vmul.f32 %v1193_v5, %v1193_v5  ;;  %v1243_v23 = vrot.slane %v1207_v13, %v2364_v8 }
 0x5d3   : > { %v1200_v61 = vmul.f32 %v1192_v53, %v1192_v53  ;;  %v1239_v4 = vrot.slane %v1206_v59, %v2364_v8  ;;  %v1273_v6 = vmul.f32 %v1268_v62, %v1227_v63  ;;  %v1271_v10 = vmul.f32 %v1268_v62, %v1223_v1 }
 0x5d4   : > { %v1275_v21 = vmul.f32 %v1268_v62, %v1231_v12  ;;  %v1209_v9 = vmul.f32 -0.5, %v1201_v14  ;;  %v1277_v25 = vmul.f32 %v1268_v62, %v1235_v22  ;;  %v1281_v31 = vmul.f32 %v1268_v62, %v1243_v23 }
 0x5d5   : > { %v1208_v7 = vmul.f32 -0.5, %v1200_v61  ;;  %v1292_v16 = vmul.f32 1.442695, %v1273_v6  ;;  %v1279_v17 = vmul.f32 %v1268_v62, %v1239_v4  ;;  %v1288_v19 = vmul.f32 1.442695, %v1271_v10  ;;  %v2539_v28 = vpop.permute.xlu0 %1262 }
 0x5d6   : > { %v1296_v26 = vmul.f32 1.442695, %v1275_v21  ;;  %v2542_v29 = vrot.slane %v1209_v9, %v2364_v8  ;;  %v1300_v30 = vmul.f32 1.442695, %v1277_v25  ;;  %v1270_v33 = vmul.f32 %v2539_v28, %v1223_v1  ;;  %v1328_v20 = vpop.permute.xlu1 %1327 }
 0x5d7   : > { %v1247_v18 = vrot.slane %v1208_v7, %v2364_v8  ;;  %2090 = vpow2.f32 %v1292_v16  ;;  %v1304_v24 = vmul.f32 1.442695, %v1279_v17  ;;  %v1308_v38 = vmul.f32 1.442695, %v1281_v31 }
 0x5d8   : > { %2092 = vpow2.f32 %v1288_v19  ;;  %v1285_v39 = vmul.f32 %v1268_v62, %v2542_v29  ;;  %v1286_v8 = vmul.f32 1.442695, %v1270_v33  ;;  %v1274_v41 = vmul.f32 %v2539_v28, %v1231_v12 }
 0x5d9   : > { %v1283_v27 = vmul.f32 %v1268_v62, %v1247_v18  ;;  %2094 = vpow2.f32 %v1304_v24  ;;  %v1272_v44 = vmul.f32 %v2539_v28, %v1227_v63  ;;  %v1278_v49 = vmul.f32 %v2539_v28, %v1239_v4 }
 0x5da   : > { %2096 = vpow2.f32 %v1296_v26  ;;  %v1316_v47 = vmul.f32 1.442695, %v1285_v39  ;;  %v1294_v48 = vmul.f32 1.442695, %v1274_v41  ;;  %v1276_v52 = vmul.f32 %v2539_v28, %v1235_v22  ;;  %v1323_v60 = vpop.permute.xlu1 %1322 }
 0x5db   : > { %v1312_v32 = vmul.f32 1.442695, %v1283_v27  ;;  %2098 = vpow2.f32 %v1300_v30  ;;  %v1290_v55 = vmul.f32 1.442695, %v1272_v44  ;;  %v1302_v56 = vmul.f32 1.442695, %v1278_v49 }
 0x5dc   : > { %v1282_v57 = vmul.f32 %v2539_v28, %v1247_v18  ;;  %v1298_v61 = vmul.f32 1.442695, %v1276_v52  ;;  %v1280_v2 = vmul.f32 %v2539_v28, %v1243_v23  ;;  %v1284_v10 = vmul.f32 %v2539_v28, %v2542_v29 }
 0x5dd   : > { %2100 = vpow2.f32 %v1312_v32 }
 0x5de   : > { %2102 = vpow2.f32 %v1308_v38  ;;  %v1310_v1 = vmul.f32 1.442695, %v1282_v57  ;;  %v1306_v7 = vmul.f32 1.442695, %v1280_v2 }
 0x5df   : > { %2104 = vpow2.f32 %v1286_v8 }
 0x5e0   : > { %2106 = vpow2.f32 %v1316_v47 }
 0x5e1   : > { %v2091_v35 = vpop.eup %2090  ;;  %2108 = vpow2.f32 %v1294_v48  ;;  %v2556_v48 = vstv %s1790_s19 }
 0x5e2   : > { %v2093_v43 = vpop.eup %2092  ;;  %2110 = vpow2.f32 %v1290_v55 }
 0x5e3   : > { %v2095_v51 = vpop.eup %2094  ;;  %2112 = vpow2.f32 %v1302_v56 }
 0x5e4   : > { %v2097_v50 = vpop.eup %2096  ;;  %2114 = vpow2.f32 %v1298_v61 }
 0x5e5   : > { %v2099_v58 = vpop.eup %2098  ;;  %2116 = vpow2.f32 %v1310_v1 }
 0x5e6   : > { %2118 = vpow2.f32 %v1306_v7 }
 0x5e7   : > { %v2101_v59 = vpop.eup %2100 }
 0x5e8   : > { %v2103_v3 = vpop.eup %2102 }
 0x5e9   : > { %v2105_v4 = vpop.eup %2104 }
 0x5ea   : > { %v2107_v11 = vpop.eup %2106 }
 0x5eb   : > { %v2109_v12 = vpop.eup %2108 }
 0x5ec   : > { %v2111_v16 = vpop.eup %2110 }
 0x5ed   : > { %v2113_v17 = vpop.eup %2112 }
 0x5ee   : > { %v2115_v21 = vpop.eup %2114 }
 0x5ef   : > { %v2117_v22 = vpop.eup %2116 }
 0x5f0   : > { %v2119_v24 = vpop.eup %2118 }
 0x68d   : > { %v1101_v34 = vpop.f32.mrb[2].mxu0 }
 0x68e   : > { %v1102_v36 = vadd.f32 %v1101_v34, %v1030_v15  ;;  %v1882_v37 = vpop.f32.mrb[3].mxu0  ;;  %v1314_v15 = vmul.f32 1.442695, %v1284_v10 }
 0x690   : > { %v1105_v40 = vsel %vm583_vm0, %v1102_v36, 0.0  ;;  %2120 = vpow2.f32 %v1314_v15  ;;  %vm1640_vm0 = vcmask 1040384  }
 0x691   : > { %v1331_v42 = vmul.f32 %v1328_v20, %v1105_v40  ;;  %v1330_v62 = vmul.f32 %v1323_v60, %v1105_v40 }
 0x693   : > { %v1335_v45 = vmul.f32 %v2091_v35, %v1331_v42  ;;  %v1333_v46 = vmul.f32 %v2093_v43, %v1331_v42  ;;  %v1341_v53 = vmul.f32 %v2095_v51, %v1331_v42  ;;  %v1337_v54 = vmul.f32 %v2097_v50, %v1331_v42 }
 0x694   : > { %v1345_v63 = vmul.f32 %v2101_v59, %v1331_v42  ;;  %v1339_v0 = vmul.f32 %v2099_v58, %v1331_v42  ;;  %v1343_v5 = vmul.f32 %v2103_v3, %v1331_v42  ;;  %v1332_v6 = vmul.f32 %v2105_v4, %v1330_v62 }
 0x695   : > { %1354 = vadd.xlane.f32.xlu1 %v1335_v45  ;;  %1350 = vadd.xlane.f32.xlu0 %v1333_v46  ;;  %v1347_v13 = vmul.f32 %v2107_v11, %v1331_v42  ;;  %v1336_v14 = vmul.f32 %v2109_v12, %v1330_v62  ;;  %v1334_v18 = vmul.f32 %v2111_v16, %v1330_v62 }
 0x696   : > { %v1340_v19 = vmul.f32 %v2113_v17, %v1330_v62  ;;  %v1338_v23 = vmul.f32 %v2115_v21, %v1330_v62  ;;  %v1344_v9 = vmul.f32 %v2117_v22, %v1330_v62  ;;  %v1342_v25 = vmul.f32 %v2119_v24, %v1330_v62 }
 0x699   : > { %1366 = vadd.xlane.f32.xlu1 %v1341_v53  ;;  %1358 = vadd.xlane.f32.xlu0 %v1337_v54 }
 0x69a   : > { %v2121_v26 = vpop.eup %2120 }
 0x69b   : > { %v1346_v27 = vmul.f32 %v2121_v26, %v1330_v62 }
 0x69d   : > { %1374 = vadd.xlane.f32.xlu1 %v1345_v63  ;;  %1362 = vadd.xlane.f32.xlu0 %v1339_v0 }
 0x6a1   : > { %1370 = vadd.xlane.f32.xlu0 %v1343_v5  ;;  %1348 = vadd.xlane.f32.xlu1 %v1332_v6 }
 0x6a5   : > { %1378 = vadd.xlane.f32.xlu0 %v1347_v13  ;;  %1356 = vadd.xlane.f32.xlu1 %v1336_v14 }
 0x6a9   : > { %1352 = vadd.xlane.f32.xlu0 %v1334_v18  ;;  %1364 = vadd.xlane.f32.xlu1 %v1340_v19 }
 0x6ad   : > { %1360 = vadd.xlane.f32.xlu0 %v1338_v23  ;;  %1372 = vadd.xlane.f32.xlu1 %v1344_v9 }
 0x6b1   : > { %1368 = vadd.xlane.f32.xlu0 %v1342_v25 }
 0x6b5   : > { %1376 = vadd.xlane.f32.xlu0 %v1346_v27 }
 0x722   : > { %v1355_v28 = vpop.xlane.xlu1 %1354  ;;  %v1351_v29 = vpop.xlane.xlu0 %1350 }
 0x723   : > { %v1444_v30 = vrot.slane %v1355_v28, 4  ;;  %v1438_v31 = vrot.slane %v1351_v29, 4 }
 0x725   : > { %v1445_v32 = vadd.f32 %v1444_v30, %v1355_v28  ;;  %v1439_v33 = vadd.f32 %v1438_v31, %v1351_v29 }
 0x726   : > { %v1367_v34 = vpop.xlane.xlu1 %1366  ;;  %v1359_v36 = vpop.xlane.xlu0 %1358 }
 0x727   : > { %v1446_v37 = vrot.slane %v1445_v32, 2  ;;  %v1440_v38 = vrot.slane %v1439_v33, 2  ;;  %v1462_v39 = vrot.slane %v1367_v34, 4  ;;  %v1450_v20 = vrot.slane %v1359_v36, 4 }
 0x729   : > { %v1447_v40 = vadd.f32 %v1446_v37, %v1445_v32  ;;  %v1441_v8 = vadd.f32 %v1440_v38, %v1439_v33  ;;  %v1463_v41 = vadd.f32 %v1462_v39, %v1367_v34  ;;  %v1451_v35 = vadd.f32 %v1450_v20, %v1359_v36 }
 0x72a   : > { %v1375_v42 = vpop.xlane.xlu1 %1374  ;;  %v1363_v43 = vpop.xlane.xlu0 %1362 }
 0x72b   : > { %v1448_v44 = vrot.slane %v1447_v40, 1  ;;  %v1442_v45 = vrot.slane %v1441_v8, 1  ;;  %v1464_v46 = vrot.slane %v1463_v41, 2  ;;  %v1452_v47 = vrot.slane %v1451_v35, 2 }
 0x72c   : > { %v1474_v49 = vrot.slane %v1375_v42, 4  ;;  %v1456_v51 = vrot.slane %v1363_v43, 4 }
 0x72d   : > { %v1449_v50 = vadd.f32 %v1448_v44, %v1447_v40  ;;  %v1443_v52 = vadd.f32 %v1442_v45, %v1441_v8  ;;  %v1465_v53 = vadd.f32 %v1464_v46, %v1463_v41  ;;  %v1453_v54 = vadd.f32 %v1452_v47, %v1451_v35 }
 0x72e   : > { %v1475_v55 = vadd.f32 %v1474_v49, %v1375_v42  ;;  %v1457_v56 = vadd.f32 %v1456_v51, %v1363_v43  ;;  %v1371_v57 = vpop.xlane.xlu0 %1370  ;;  %v1349_v62 = vpop.xlane.xlu1 %1348  ;;  %v2587_v49 = vstv %s1428_s25 }
 0x72f   : > { %v2559_v58 = vadd.f32 %v2556_v48, %v1449_v50  ;;  %v2562_v59 = vadd.f32 %v2556_v48, %v1443_v52  ;;  %v1466_v60 = vrot.slane %v1465_v53, 1  ;;  %v1454_v61 = vrot.slane %v1453_v54, 1 }
 0x730   : > { %v1476_v63 = vrot.slane %v1475_v55, 2  ;;  %v1458_v0 = vrot.slane %v1457_v56, 2  ;;  %v1468_v1 = vrot.slane %v1371_v57, 4  ;;  %v1380_v6 = vrot.slane %v1349_v62, 4 }
 0x731   : > { %v1521_v2 = vand.u32 2147483647, %v2559_v58  ;;  %v1520_v3 = vand.u32 2147483647, %v2562_v59  ;;  %v1467_v4 = vadd.f32 %v1466_v60, %v1465_v53  ;;  %v1455_v5 = vadd.f32 %v1454_v61, %v1453_v54 }
 0x732   : > { %v1477_v10 = vadd.f32 %v1476_v63, %v1475_v55  ;;  %v1459_v11 = vadd.f32 %v1458_v0, %v1457_v56  ;;  %v1469_v12 = vadd.f32 %v1468_v1, %v1371_v57  ;;  %v1381_v23 = vadd.f32 %v1380_v6, %v1349_v62  ;;  %v1379_v9 = vpop.xlane.xlu0 %1378  ;;  %v1357_v39 = vpop.xlane.xlu1 %1356 }
 0x733   : > { %v1529_v7 = vsub.f32 0.0, %v1521_v2  ;;  %v1528_v13 = vsub.f32 0.0, %v1520_v3  ;;  %v2567_v14 = vadd.f32 %v2556_v48, %v1467_v4  ;;  %v2570_v15 = vadd.f32 %v2556_v48, %v1455_v5 }
 0x734   : > { %v1478_v17 = vrot.slane %v1477_v10, 1  ;;  %v1460_v18 = vrot.slane %v1459_v11, 1  ;;  %v1470_v19 = vrot.slane %v1469_v12, 2  ;;  %v1480_v30 = vrot.slane %v1379_v9, 4 }
 0x735   : > { %v1538_v16 = vmul.f32 1.442695, %v1529_v7  ;;  %v1536_v21 = vmul.f32 1.442695, %v1528_v13  ;;  %v1524_v22 = vand.u32 2147483647, %v2567_v14  ;;  %vm1505_vm15 = vcmp.ne.f32.partialorder %v2559_v58, %v2559_v58 }
 0x736   : > { %v1522_v24 = vand.u32 2147483647, %v2570_v15  ;;  %v1479_v26 = vadd.f32 %v1478_v17, %v1477_v10  ;;  %v1461_v27 = vadd.f32 %v1460_v18, %v1459_v11  ;;  %v1471_v29 = vadd.f32 %v1470_v19, %v1469_v12  ;;  %v1353_v62 = vpop.xlane.xlu0 %1352  ;;  %v1365_v63 = vpop.xlane.xlu1 %1364 }
 0x737   : > { %2122 = vpow2.f32 %v1538_v16  ;;  %v1532_v25 = vsub.f32 0.0, %v1524_v22  ;;  %v1382_v34 = vrot.slane %v1381_v23, 2  ;;  %v1481_v38 = vadd.f32 %v1480_v30, %v1379_v9 }
 0x738   : > { %2124 = vpow2.f32 %v1536_v21  ;;  %v1530_v28 = vsub.f32 0.0, %v1522_v24  ;;  %v2575_v32 = vadd.f32 %v2556_v48, %v1479_v26  ;;  %v2578_v33 = vadd.f32 %v2556_v48, %v1461_v27 }
 0x739   : > { %v1544_v31 = vmul.f32 1.442695, %v1532_v25  ;;  %v1472_v37 = vrot.slane %v1471_v29, 1  ;;  %v1383_v41 = vadd.f32 %v1382_v34, %v1381_v23  ;;  %v1482_v35 = vrot.slane %v1481_v38, 2 }
 0x73a   : > { %v1540_v36 = vmul.f32 1.442695, %v1530_v28  ;;  %v1526_v20 = vand.u32 2147483647, %v2575_v32  ;;  %v1523_v40 = vand.u32 2147483647, %v2578_v33  ;;  %vm1504_vm1 = vcmp.ne.f32.partialorder %v2562_v59, %v2562_v59 }
 0x73b   : > { %2126 = vpow2.f32 %v1544_v31  ;;  %v1473_v8 = vadd.f32 %v1472_v37, %v1471_v29  ;;  %v1392_v42 = vrot.slane %v1357_v39, 4  ;;  %v1497_v46 = vmax.f32 %v2559_v58, 0.0 }
 0x73c   : > { %2128 = vpow2.f32 %v1540_v36  ;;  %v1534_v43 = vsub.f32 0.0, %v1526_v20  ;;  %v1531_v44 = vsub.f32 0.0, %v1523_v40  ;;  %v1496_v47 = vmax.f32 %v2562_v59, 0.0 }
 0x73d   : > { %v2583_v45 = vadd.f32 %v2556_v48, %v1473_v8  ;;  %v1500_v50 = vmax.f32 %v2567_v14, 0.0  ;;  %v1498_v52 = vmax.f32 %v2570_v15, 0.0  ;;  %v1384_v57 = vrot.slane %v1383_v41, 1 }
 0x73e   : > { %v1542_v53 = vmul.f32 1.442695, %v1531_v44  ;;  %v1483_v60 = vadd.f32 %v1482_v35, %v1481_v38  ;;  %v1393_v61 = vadd.f32 %v1392_v42, %v1357_v39  ;;  %v1548_v2 = vmul.f32 1.442695, %v1534_v43  ;;  %v1361_v43 = vpop.xlane.xlu0 %1360 }
 0x73f   : > { %v1525_v54 = vand.u32 2147483647, %v2583_v45  ;;  %v1499_v4 = vmax.f32 %v2578_v33, 0.0  ;;  %v1386_v7 = vrot.slane %v1353_v62, 4  ;;  %v1404_v10 = vrot.slane %v1365_v63, 4 }
 0x740   : > { %2130 = vpow2.f32 %v1542_v53  ;;  %v1385_v13 = vadd.f32 %v1384_v57, %v1383_v41  ;;  %v1484_v16 = vrot.slane %v1483_v60, 1  ;;  %v1394_v17 = vrot.slane %v1393_v61, 2 }
 0x741   : > { %v2123_v51 = vpop.eup %2122  ;;  %v1533_v5 = vsub.f32 0.0, %v1525_v54  ;;  %v1387_v36 = vadd.f32 %v1386_v7, %v1353_v62  ;;  %v1405_v37 = vadd.f32 %v1404_v10, %v1365_v63  ;;  %vm1508_vm5 = vcmp.ne.f32.partialorder %v2567_v14, %v2567_v14 }
 0x742   : > { %v2125_v55 = vpop.eup %2124  ;;  %v1561_v56 = vadd.f32 1.0, %v2123_v51  ;;  %v1564_v0 = vmul.f32 -0.5, %v2123_v51  ;;  %v1567_v6 = vand.u32 2147483647, %v2123_v51  ;;  %v1485_v27 = vadd.f32 %v1484_v16, %v1483_v60 }
 0x743   : > { %v1552_v1 = vadd.f32 1.0, %v2125_v55  ;;  %v1555_v3 = vmul.f32 -0.5, %v2125_v55  ;;  %v1546_v12 = vmul.f32 1.442695, %v1533_v5  ;;  %v1558_v21 = vand.u32 2147483647, %v2125_v55 }
 0x744   : > { %2132 = vlog2.f32 %v1561_v56  ;;  %v1565_v19 = vadd.f32 1.0, %v1564_v0  ;;  %vm2593_vm13 = vcmp.lt.f32.partialorder %v1567_v6, 0.0004427343  ;;  %v1395_v30 = vadd.f32 %v1394_v17, %v1393_v61 }
 0x745   : > { %2134 = vlog2.f32 %v1552_v1  ;;  %v2127_v11 = vpop.eup %2126  ;;  %v1556_v23 = vadd.f32 1.0, %v1555_v3  ;;  %vm2597_vm14 = vcmp.lt.f32.partialorder %v1558_v21, 0.0004427343  ;;  %v2602_v34 = vadd.f32 %v2556_v48, %v1485_v27 }
 0x746   : > { %v2129_v18 = vpop.eup %2128  ;;  %v1588_v22 = vadd.f32 1.0, %v2127_v11  ;;  %2136 = vpow2.f32 %v1548_v2  ;;  %v1591_v9 = vmul.f32 -0.5, %v2127_v11  ;;  %v1594_v26 = vand.u32 2147483647, %v2127_v11 }
 0x747   : > { %v1570_v24 = vadd.f32 1.0, %v2129_v18  ;;  %2138 = vpow2.f32 %v1546_v12  ;;  %v1573_v28 = vmul.f32 -0.5, %v2129_v18  ;;  %v1576_v29 = vand.u32 2147483647, %v2129_v18 }
 0x748   : > { %2140 = vlog2.f32 %v1588_v22  ;;  %v1566_v38 = vmul.f32 %v2123_v51, %v1565_v19  ;;  %v1557_v39 = vmul.f32 %v2125_v55, %v1556_v23  ;;  %v1592_v20 = vadd.f32 1.0, %v1591_v9 }
 0x749   : > { %2142 = vlog2.f32 %v1570_v24  ;;  %v1430_v40 = vadd.f32 %v2587_v49, %v1385_v13  ;;  %vm2611_vm2 = vcmp.lt.f32.partialorder %v1594_v26, 0.0004427343  ;;  %v1527_v48 = vand.u32 2147483647, %v2602_v34 }
 0x74a   : > { %v2607_v8 = vpop.eup %2130  ;;  %v1388_v35 = vrot.slane %v1387_v36, 2  ;;  %v1406_v42 = vrot.slane %v1405_v37, 2  ;;  %v1574_v51 = vadd.f32 1.0, %v1573_v28  ;;  %vm2616_vm4 = vcmp.lt.f32.partialorder %v1576_v29, 0.0004427343 }
 0x74b   : > { %v1579_v54 = vadd.f32 1.0, %v2607_v8  ;;  %v1396_v55 = vrot.slane %v1395_v30, 1  ;;  %v1535_v60 = vsub.f32 0.0, %v1527_v48  ;;  %v1593_v0 = vmul.f32 %v2127_v11, %v1592_v20 }
 0x74c   : > { %v1389_v61 = vadd.f32 %v1388_v35, %v1387_v36  ;;  %v1407_v62 = vadd.f32 %v1406_v42, %v1405_v37  ;;  %v1398_v1 = vrot.slane %v1361_v43, 4  ;;  %vm1506_vm6 = vcmp.ne.f32.partialorder %v2570_v15, %v2570_v15 }
 0x74d   : > { %2144 = vlog2.f32 %v1579_v54  ;;  %v1582_v5 = vmul.f32 -0.5, %v2607_v8  ;;  %v1550_v6 = vmul.f32 1.442695, %v1535_v60  ;;  %v1575_v13 = vmul.f32 %v2129_v18, %v1574_v51 }
 0x74e   : > { %v2133_v44 = vpop.eup %2132  ;;  %v1390_v7 = vrot.slane %v1389_v61, 1  ;;  %v1408_v16 = vrot.slane %v1407_v62, 1  ;;  %v1585_v21 = vand.u32 2147483647, %v2607_v8  ;;  %v1397_v23 = vadd.f32 %v1396_v55, %v1395_v30 }
 0x74f   : > { %v2135_v56 = vpop.eup %2134  ;;  %v1563_v57 = vmul.f32 0.6931472, %v2133_v44  ;;  %2146 = vpow2.f32 %v1550_v6  ;;  %v1399_v26 = vadd.f32 %v1398_v1, %v1361_v43  ;;  %v1583_v27 = vadd.f32 1.0, %v1582_v5 }
 0x750   : > { %v1554_v63 = vmul.f32 0.6931472, %v2135_v56  ;;  %v2623_v2 = vpop.eup %2136  ;;  %v1391_v25 = vadd.f32 %v1390_v7, %v1389_v61  ;;  %v1409_v31 = vadd.f32 %v1408_v16, %v1407_v62  ;;  %vm1507_vm7 = vcmp.ne.f32.partialorder %v2578_v33, %v2578_v33 }
 0x751   : > { %v1569_v3 = vsel %vm2593_vm13, %v1566_v38, %v1563_v57  ;;  %v2630_v10 = vpop.eup %2138  ;;  %v1400_v41 = vrot.slane %v1399_v26, 2  ;;  %v1584_v48 = vmul.f32 %v2607_v8, %v1583_v27  ;;  %v1432_v35 = vadd.f32 %v2587_v49, %v1397_v23 }
 0x752   : > { %v1625_v11 = vadd.f32 %v1569_v3, %v1497_v46  ;;  %v1560_v12 = vsel %vm2597_vm14, %v1557_v39, %v1554_v63  ;;  %v2141_v17 = vpop.eup %2140  ;;  %v1597_v22 = vadd.f32 1.0, %v2630_v10  ;;  %v1369_v46 = vpop.xlane.xlu0 %1368  ;;  %v1431_v30 = vadd.f32 %v2587_v49, %v1391_v25 }
 0x753   : > { %v1624_v19 = vadd.f32 %v1560_v12, %v1496_v47  ;;  %v2143_v9 = vpop.eup %2142  ;;  %v1590_v24 = vmul.f32 0.6931472, %v2141_v17  ;;  %v1373_v39 = vpop.xlane.xlu1 %1372  ;;  %v1401_v44 = vadd.f32 %v1400_v41, %v1399_v26  ;;  %vm1586_vm8 = vcmp.lt.f32.partialorder %v1585_v21, 0.0004427343 }
 0x754   : > { %v1572_v18 = vmul.f32 0.6931472, %v2143_v9  ;;  %2148 = vlog2.f32 %v1597_v22  ;;  %v1633_v47 = vsel %vm1505_vm15, %v2559_v58, %v1625_v11  ;;  %v1600_v58 = vmul.f32 -0.5, %v2630_v10 }
 0x755   : > { %v1596_v28 = vsel %vm2611_vm2, %v1593_v0, %v1590_v24  ;;  %v1632_v29 = vsel %vm1504_vm1, %v2562_v59, %v1624_v19  ;;  %v1642_v20 = vsel %vm1640_vm0, %v1431_v30, %v1633_v47  ;;  %v1416_v51 = vrot.slane %v1373_v39, 4 }
 0x756   : > { %v1628_v36 = vadd.f32 %v1596_v28, %v1500_v50  ;;  %v1578_v37 = vsel %vm2616_vm4, %v1575_v13, %v1572_v18  ;;  %v1641_v38 = vsel %vm1640_vm0, %v1430_v40, %v1632_v29  ;;  %v1434_v50 = vadd.f32 %v2587_v49, %v1409_v31  ;;  %1651 = vst.msk [vmem:[%s2644_s0 + $0x2] sm:$0x3] %vm1649_vm3, %v1642_v20  ;;  %v1377_v53 = vpop.xlane.xlu0 %1376 }
 0x757   : > { %v1626_v59 = vadd.f32 %v1578_v37, %v1498_v52  ;;  %1650 = vst.msk [vmem:[%s2644_s0] sm:$0x3] %vm1649_vm3, %v1641_v38  ;;  %v1606_v40 = vadd.f32 1.0, %v2623_v2  ;;  %v2145_v42 = vpop.eup %2144  ;;  %v1601_v55 = vadd.f32 1.0, %v1600_v58  ;;  %v1417_v57 = vadd.f32 %v1416_v51, %v1373_v39 }
 0x758   : > { %v1636_v52 = vsel %vm1508_vm5, %v2567_v14, %v1628_v36  ;;  %v1581_v54 = vmul.f32 0.6931472, %v2145_v42  ;;  %v1402_v14 = vrot.slane %v1401_v44, 1  ;;  %v1410_v60 = vrot.slane %v1369_v46, 4 }
 0x759   : > { %v1634_v43 = vsel %vm1506_vm6, %v2570_v15, %v1626_v59  ;;  %v1645_v8 = vsel %vm1640_vm0, %v1434_v50, %v1636_v52  ;;  %2150 = vlog2.f32 %v1606_v40  ;;  %v1603_v15 = vand.u32 2147483647, %v2630_v10  ;;  %v2147_v0 = vpop.eup %2146 }
 0x75a   : > { %v1643_v56 = vsel %vm1640_vm0, %v1432_v35, %v1634_v43  ;;  %1654 = vst.msk [vmem:[%s2644_s0 + $0x8] sm:$0x3] %vm1649_vm3, %v1645_v8  ;;  %v1587_v61 = vsel %vm1586_vm8, %v1584_v48, %v1581_v54  ;;  %v1609_v62 = vmul.f32 -0.5, %v2623_v2  ;;  %v1422_v63 = vrot.slane %v1377_v53, 4 }
 0x75b   : > { %1652 = vst.msk [vmem:[%s2644_s0 + $0x4] sm:$0x3] %vm1649_vm3, %v1643_v56  ;;  %v1627_v1 = vadd.f32 %v1587_v61, %v1499_v4  ;;  %v1403_v3 = vadd.f32 %v1402_v14, %v1401_v44  ;;  %v1418_v5 = vrot.slane %v1417_v57, 2  ;;  %v1411_v6 = vadd.f32 %v1410_v60, %v1369_v46 }
 0x75c   : > { %v1501_v11 = vmax.f32 %v2583_v45, 0.0  ;;  %v1602_v12 = vmul.f32 %v2630_v10, %v1601_v55  ;;  %v1615_v13 = vadd.f32 1.0, %v2147_v0  ;;  %v1423_v16 = vadd.f32 %v1422_v63, %v1377_v53 }
 0x75d   : > { %v1635_v19 = vsel %vm1507_vm7, %v2578_v33, %v1627_v1  ;;  %v1433_v21 = vadd.f32 %v2587_v49, %v1403_v3  ;;  %v1419_v4 = vadd.f32 %v1418_v5, %v1417_v57  ;;  %vm1604_vm9 = vcmp.lt.f32.partialorder %v1603_v15, 0.0004427343 }
 0x75e   : > { %v2149_v7 = vpop.eup %2148  ;;  %v1610_v22 = vadd.f32 1.0, %v1609_v62  ;;  %v1412_v23 = vrot.slane %v1411_v6, 2  ;;  %2152 = vlog2.f32 %v1615_v13  ;;  %v1424_v10 = vrot.slane %v1423_v16, 2 }
 0x75f   : > { %v1599_v17 = vmul.f32 0.6931472, %v2149_v7  ;;  %v1644_v24 = vsel %vm1640_vm0, %v1433_v21, %v1635_v19  ;;  %v1420_v25 = vrot.slane %v1419_v4, 1  ;;  %v1612_v26 = vand.u32 2147483647, %v2623_v2 }
 0x760   : > { %1653 = vst.msk [vmem:[%s2644_s0 + $0x6] sm:$0x3] %vm1649_vm3, %v1644_v24  ;;  %v1413_v46 = vadd.f32 %v1412_v23, %v1411_v6  ;;  %v1618_v27 = vmul.f32 -0.5, %v2147_v0  ;;  %v1425_v33 = vadd.f32 %v1424_v10, %v1423_v16  ;;  %v1611_v30 = vmul.f32 %v2623_v2, %v1610_v22 }
 0x761   : > { %v1605_v9 = vsel %vm1604_vm9, %v1602_v12, %v1599_v17  ;;  %v1421_v31 = vadd.f32 %v1420_v25, %v1419_v4  ;;  %v1502_v36 = vmax.f32 %v2575_v32, 0.0  ;;  %vm1509_vm10 = vcmp.ne.f32.partialorder %v2583_v45, %v2583_v45 }
 0x762   : > { %v1629_v18 = vadd.f32 %v1605_v9, %v1501_v11  ;;  %v1414_v28 = vrot.slane %v1413_v46, 1  ;;  %vm1613_vm11 = vcmp.lt.f32.partialorder %v1612_v26, 0.0004427343  ;;  %v1619_v39 = vadd.f32 1.0, %v1618_v27 }
 0x763   : > { %v2151_v47 = vpop.eup %2150  ;;  %v1426_v59 = vrot.slane %v1425_v33, 1  ;;  %v1621_v41 = vand.u32 2147483647, %v2147_v0  ;;  %vm1510_vm12 = vcmp.ne.f32.partialorder %v2575_v32, %v2575_v32  ;;  %v1436_v2 = vadd.f32 %v2587_v49, %v1421_v31 }
 0x764   : > { %v1608_v29 = vmul.f32 0.6931472, %v2151_v47  ;;  %v1415_v37 = vadd.f32 %v1414_v28, %v1413_v46  ;;  %v1637_v38 = vsel %vm1509_vm10, %v2583_v45, %v1629_v18  ;;  %v1620_v42 = vmul.f32 %v2147_v0, %v1619_v39 }
 0x765   : > { %v1427_v43 = vadd.f32 %v1426_v59, %v1425_v33  ;;  %v1503_v8 = vmax.f32 %v2602_v34, 0.0  ;;  %vm1622_vm13 = vcmp.lt.f32.partialorder %v1621_v41, 0.0004427343  ;;  %vm1511_vm14 = vcmp.ne.f32.partialorder %v2602_v34, %v2602_v34 }
 0x766   : > { %v1614_v58 = vsel %vm1613_vm11, %v1611_v30, %v1608_v29  ;;  %v1435_v50 = vadd.f32 %v2587_v49, %v1415_v37 }
 0x767   : > { %v1630_v20 = vadd.f32 %v1614_v58, %v1502_v36 }
 0x768   : > { %v2153_v48 = vpop.eup %2152  ;;  %v1646_v52 = vsel %vm1640_vm0, %v1435_v50, %v1637_v38 }
 0x769   : > { %v1638_v35 = vsel %vm1510_vm12, %v2575_v32, %v1630_v20  ;;  %1655 = vst.msk [vmem:[%s2644_s0 + $0xa] sm:$0x3] %vm1649_vm3, %v1646_v52  ;;  %v1617_v40 = vmul.f32 0.6931472, %v2153_v48  ;;  %v1437_v32 = vadd.f32 %v2587_v49, %v1427_v43 }
 0x76a   : > { %v1647_v45 = vsel %vm1640_vm0, %v1436_v2, %v1638_v35 }
 0x76b   : > { %1656 = vst.msk [vmem:[%s2644_s0 + $0xc] sm:$0x3] %vm1649_vm3, %v1647_v45  ;;  %v1623_v44 = vsel %vm1622_vm13, %v1620_v42, %v1617_v40 }
 0x76c   : > { %v1631_v51 = vadd.f32 %v1623_v44, %v1503_v8 }
 0x76e   : > { %v1639_v53 = vsel %vm1511_vm14, %v2602_v34, %v1631_v51 }
 0x76f   : > { %v1648_v54 = vsel %vm1640_vm0, %v1437_v32, %v1639_v53 }
 0x770   : > { %1657 = vst.msk [vmem:[%s2644_s0 + $0xe] sm:$0x3] %vm1649_vm3, %v1648_v54 }
 0x771 PF: > { %s28_s21 = sadd.s32 1, %s2198_s21  }
 0x772   : > { %p25_p5 = scmp.ge.s32.totalorder %s28_s21, 4  }
 0x774   :  { %27 = sbr.rel (!%p25_p5) target bundleno = 4 (0x4), region = 129 }
 0x77b   :  { %1679 = vsyncpa [#allocation3], 1 }
 0x77c   :  { %1681 = vsyncpa [#allocation3 + $0x1], 1 }
 0x77d   :  { %1682 = vsyncpa [#allocation5], 1 }

</bundles_post_ra>
